<compile_context>
chip_gen: v7x
topology: tpu7x:2x2x1
jax: 0.10.0
libtpu: 0.0.40
codegen_flags: <defaults>
</compile_context>

<pallas_src>
import jax
import jax.numpy as jnp
from jax import lax
from jax.experimental import pallas as pl
from jax.experimental.pallas import tpu as pltpu


def _round_up(n, m):
    return ((n + m - 1) // m) * m


def _mlp_kernel(x_ref, w1_ref, b1_ref, w2_ref, b2_ref, o_ref):
    """relu(x @ W1 + b1) @ W2 + b2 on one (packed) batch tile.

    x_ref : (tbg, G*obs)       f32  (cast to bf16 here -> no extra HBM pass)
    w1_ref: (G*obs, G*hidden)  bf16 (block-diagonal replication of W1)
    b1_ref: (1, G*hidden)      f32
    w2_ref: (G*hidden, G*na)   bf16 (block-diagonal replication of W2)
    b2_ref: (1, G*na)          f32
    o_ref : (tbg, G*na)        f32  (G*na is a multiple of 128 -> dense stores)
    """
    x = x_ref[...].astype(jnp.bfloat16)                                 # VPU cast in VMEM
    h = jnp.dot(x, w1_ref[...], preferred_element_type=jnp.float32)    # MXU, f32 acc
    h = jnp.maximum(h + b1_ref[...], 0.0)                               # f32 bias + ReLU
    y = jnp.dot(h.astype(jnp.bfloat16), w2_ref[...],
                preferred_element_type=jnp.float32) + b2_ref[...]       # MXU, f32 acc
    o_ref[...] = y.astype(o_ref.dtype)


def _xla_forward(x, w1, b1, w2, b2):
    """Plain-XLA path (same bf16-operand / f32-accumulate numerics as the kernel)."""
    h = jnp.dot(x.astype(jnp.bfloat16), w1.astype(jnp.bfloat16),
                preferred_element_type=jnp.float32) + b1
    h = jnp.maximum(h, 0.0)
    return jnp.dot(h.astype(jnp.bfloat16), w2.astype(jnp.bfloat16),
                   preferred_element_type=jnp.float32) + b2


def _pick_group(obs, hidden, n_actions, weight_budget_bytes=8 << 20):
    """How many batch rows to pack per 128-lane output row."""
    if n_actions >= 128:
        return 1
    g = max(1, 128 // n_actions)
    # Block-diagonal weights are replicated g x g; keep them comfortably small.
    while g > 1 and g * g * (obs * hidden + hidden * n_actions) * 2 > weight_budget_bytes:
        g //= 2
    return g


def net_forward(x, w1, b1, w2, b2, *, max_rows_per_tile=32768, min_pallas_rows=1024):
    """Fused MLP forward: relu(x @ W1 + b1) @ W2 + b2.

    x:  (B, obs_size) float32
    w1: (obs_size, hidden) float32, b1: (1, hidden) float32
    w2: (hidden, n_actions) float32, b2: (1, n_actions) float32
    returns (B, n_actions) float32
    """
    B, obs = x.shape
    hidden = w1.shape[1]
    na = w2.shape[1]

    # Small-batch fallback: the pallas_call would be pure launch/DMA overhead.
    if B < min_pallas_rows:
        return _xla_forward(x, w1, b1, w2, b2)

    G = _pick_group(obs, hidden, na)
    rem = B % G
    Bm = B - rem

    # Lane-dense packing: G consecutive rows share one 128-lane output row.
    # The x/out reshapes are contiguous row-major reshapes (no HBM data movement);
    # kron(I_G, W) computes exactly the same per-row MLP (off-diagonal blocks = 0).
    xp = x[:Bm].reshape(Bm // G, G * obs)
    eye = jnp.eye(G, dtype=w1.dtype)
    w1p = jnp.kron(eye, w1).astype(jnp.bfloat16)      # (G*obs,    G*hidden)
    w2p = jnp.kron(eye, w2).astype(jnp.bfloat16)      # (G*hidden, G*na)
    b1p = jnp.tile(b1.reshape(1, hidden), (1, G))     # (1, G*hidden) f32
    b2p = jnp.tile(b2.reshape(1, na), (1, G))         # (1, G*na)     f32

    n_groups = Bm // G
    # Large tiles amortize the ~0.35us/step grid overhead, but aim for >= 2 grid
    # steps so the "parallel" batch axis can land on both v7x TensorCores.
    max_tbg = max(8, (max_rows_per_tile // G) // 8 * 8)
    tbg = min(max_tbg, max(8, _round_up(pl.cdiv(n_groups, 2), 8)))
    grid = (pl.cdiv(n_groups, tbg),)                  # boundary block is masked

    flops = 2 * Bm * (obs * hidden + hidden * na)
    bytes_accessed = (Bm * obs * 4 + Bm * na * 4
                      + (G * obs) * (G * hidden) * 2
                      + (G * hidden) * (G * na) * 2
                      + G * (hidden + na) * 4)

    out_p = pl.pallas_call(
        _mlp_kernel,
        out_shape=jax.ShapeDtypeStruct((n_groups, G * na), jnp.float32),
        grid_spec=pltpu.PrefetchScalarGridSpec(
            num_scalar_prefetch=0,
            grid=grid,
            in_specs=[
                # x: tiled over the packed batch, software-pipelined across steps.
                pl.BlockSpec((tbg, G * obs), lambda i: (i, 0)),
                # Params: constant block index -> DMA'd once, VMEM-resident.
                # (pl.Buffered(1) could drop their second buffer, but they are
                #  only KiB/MiB-scale so the default double buffer is kept.)
                pl.BlockSpec((G * obs, G * hidden), lambda i: (0, 0)),
                pl.BlockSpec((1, G * hidden), lambda i: (0, 0)),
                pl.BlockSpec((G * hidden, G * na), lambda i: (0, 0)),
                pl.BlockSpec((1, G * na), lambda i: (0, 0)),
            ],
            out_specs=pl.BlockSpec((tbg, G * na), lambda i: (i, 0)),
        ),
        # Independent batch tiles -> shard across TensorCores (v7x); no-op on 1-TC chips.
        compiler_params=pltpu.CompilerParams(
            dimension_semantics=("parallel",)),
        cost_estimate=pl.CostEstimate(
            flops=flops, transcendentals=0, bytes_accessed=bytes_accessed),
    )(xp, w1p, b1p, w2p, b2p)

    out = out_p.reshape(Bm, na)
    if rem:
        # < G leftover rows: cheaper through plain XLA than padding x in HBM.
        out = jnp.concatenate([out, _xla_forward(x[Bm:], w1, b1, w2, b2)], axis=0)
    return out


def init_params(key, obs_size, hidden_size, n_actions):
    """Deterministic synthetic params matching nn.Linear init shapes.

    torch stores Linear weight as (out, in); we keep the transposed (in, out)
    layout so the kernel computes plain x @ W. Biases kept 2D (1, out).
    """
    k1, k2, k3, k4 = jax.random.split(key, 4)
    s1 = 1.0 / jnp.sqrt(obs_size)
    s2 = 1.0 / jnp.sqrt(hidden_size)
    w1 = jax.random.uniform(k1, (obs_size, hidden_size), jnp.float32, -s1, s1)
    b1 = jax.random.uniform(k2, (1, hidden_size), jnp.float32, -s1, s1)
    w2 = jax.random.uniform(k3, (hidden_size, n_actions), jnp.float32, -s2, s2)
    b2 = jax.random.uniform(k4, (1, n_actions), jnp.float32, -s2, s2)
    return w1, b1, w2, b2


def _reference(x, w1, b1, w2, b2):
    # Same math as the kernel: bf16 operands, f32 accumulation/epilogue.
    # TODO(synk): deliberate bf16-MXU semantics; an all-f32 PyTorch Net differs by ~1e-2 rel.
    f32 = jnp.float32
    xb = x.astype(jnp.bfloat16).astype(f32)
    w1b = w1.astype(jnp.bfloat16).astype(f32)
    w2b = w2.astype(jnp.bfloat16).astype(f32)
    h = jnp.maximum(jnp.dot(xb, w1b, precision=lax.Precision.HIGHEST) + b1, 0.0)
    hb = h.astype(jnp.bfloat16).astype(f32)
    return jnp.dot(hb, w2b, precision=lax.Precision.HIGHEST) + b2


if __name__ == "__main__":
    obs_size, hidden_size, n_actions = 16, 32, 4

    key = jax.random.PRNGKey(0)
    kx1, kx2, kx3, kp = jax.random.split(key, 4)
    w1, b1, w2, b2 = init_params(kp, obs_size, hidden_size, n_actions)

    # 1) Kernel path: 65 packed groups -> 2 grid steps, boundary-masked last block.
    B1 = 2080
    x1 = jax.random.normal(kx1, (B1, obs_size), jnp.float32)
    out1 = jax.block_until_ready(net_forward(x1, w1, b1, w2, b2))
    ref1 = _reference(x1, w1, b1, w2, b2)
    assert out1.shape == (B1, n_actions)
    assert jnp.allclose(out1, ref1, atol=5e-3, rtol=5e-3), float(jnp.max(jnp.abs(out1 - ref1)))

    # 2) Kernel path with a row remainder (B % 32 != 0) -> packed kernel + tiny XLA tail.
    B2 = 2077
    x2 = jax.random.normal(kx2, (B2, obs_size), jnp.float32)
    out2 = jax.block_until_ready(net_forward(x2, w1, b1, w2, b2))
    ref2 = _reference(x2, w1, b1, w2, b2)
    assert out2.shape == (B2, n_actions)
    assert jnp.allclose(out2, ref2, atol=5e-3, rtol=5e-3), float(jnp.max(jnp.abs(out2 - ref2)))

    # 3) Small batch -> plain-XLA fallback (kernel would be pure launch overhead).
    x3 = jax.random.normal(kx3, (8, obs_size), jnp.float32)
    out3 = jax.block_until_ready(net_forward(x3, w1, b1, w2, b2))
    ref3 = _reference(x3, w1, b1, w2, b2)
    assert out3.shape == (8, n_actions)
    assert jnp.allclose(out3, ref3, atol=5e-3, rtol=5e-3), float(jnp.max(jnp.abs(out3 - ref3)))

    print("KERNEL_OK")
</pallas_src>

<mosaic_0001>
module attributes {stable_mosaic.version = 11 : i64} {
  func.func @_mlp_kernel(%arg0: i32, %arg1: memref<40x512xf32, #tpu.memory_space<vmem>>, %arg2: memref<512x1024xbf16, #tpu.memory_space<vmem>>, %arg3: memref<1x1024xf32, #tpu.memory_space<vmem>>, %arg4: memref<1024x128xbf16, #tpu.memory_space<vmem>>, %arg5: memref<1x128xf32, #tpu.memory_space<vmem>>, %arg6: memref<40x128xf32, #tpu.memory_space<vmem>>) attributes {dimension_semantics = [#tpu.dimension_semantics<parallel>], iteration_bounds = array<i64: 2>, scalar_prefetch = 0 : i64, scratch_operands = 0 : i64, tpu.core_type = #tpu.core_type<tc>, window_params = [{transform_indices = @transform_0, window_bounds = array<i64: 40, 512>}, {pipeline_mode = #tpu.pipeline_mode<synchronous>, transform_indices = @transform_1, window_bounds = array<i64: 512, 1024>}, {pipeline_mode = #tpu.pipeline_mode<synchronous>, transform_indices = @transform_2, window_bounds = array<i64: 1, 1024>}, {pipeline_mode = #tpu.pipeline_mode<synchronous>, transform_indices = @transform_3, window_bounds = array<i64: 1024, 128>}, {pipeline_mode = #tpu.pipeline_mode<synchronous>, transform_indices = @transform_4, window_bounds = array<i64: 1, 128>}, {transform_indices = @transform_5, window_bounds = array<i64: 40, 128>}]} {
    %c0 = arith.constant 0 : index
    %c0_0 = arith.constant 0 : index
    %0 = vector.load %arg1[%c0, %c0_0] : memref<40x512xf32, #tpu.memory_space<vmem>>, vector<40x512xf32>
    %1 = arith.truncf %0 : vector<40x512xf32> to vector<40x512xbf16>
    %c0_1 = arith.constant 0 : index
    %c0_2 = arith.constant 0 : index
    %2 = vector.load %arg2[%c0_1, %c0_2] : memref<512x1024xbf16, #tpu.memory_space<vmem>>, vector<512x1024xbf16>
    %cst = arith.constant dense<0.000000e+00> : vector<40x1024xf32>
    %3 = tpu.matmul %1, %2, %cst {dimension_numbers = #tpu.dot_dimension_numbers<[1], [0], [0], [1], [0, 0, 1, 1], [], []>} : vector<40x512xbf16>, vector<512x1024xbf16>, vector<40x1024xf32> -> vector<40x1024xf32>
    %c0_3 = arith.constant 0 : index
    %c0_4 = arith.constant 0 : index
    %4 = vector.load %arg3[%c0_3, %c0_4] : memref<1x1024xf32, #tpu.memory_space<vmem>>, vector<1x1024xf32>
    %5 = vector.broadcast %4 : vector<1x1024xf32> to vector<40x1024xf32>
    %6 = arith.addf %3, %5 : vector<40x1024xf32>
    %cst_5 = arith.constant 0.000000e+00 : f32
    %7 = vector.broadcast %cst_5 : f32 to vector<40x1024xf32>
    %8 = arith.maximumf %6, %7 : vector<40x1024xf32>
    %9 = arith.truncf %8 : vector<40x1024xf32> to vector<40x1024xbf16>
    %c0_6 = arith.constant 0 : index
    %c0_7 = arith.constant 0 : index
    %10 = vector.load %arg4[%c0_6, %c0_7] : memref<1024x128xbf16, #tpu.memory_space<vmem>>, vector<1024x128xbf16>
    %cst_8 = arith.constant dense<0.000000e+00> : vector<40x128xf32>
    %11 = tpu.matmul %9, %10, %cst_8 {dimension_numbers = #tpu.dot_dimension_numbers<[1], [0], [0], [1], [0, 0, 1, 1], [], []>} : vector<40x1024xbf16>, vector<1024x128xbf16>, vector<40x128xf32> -> vector<40x128xf32>
    %c0_9 = arith.constant 0 : index
    %c0_10 = arith.constant 0 : index
    %12 = vector.load %arg5[%c0_9, %c0_10] : memref<1x128xf32, #tpu.memory_space<vmem>>, vector<1x128xf32>
    %13 = vector.broadcast %12 : vector<1x128xf32> to vector<40x128xf32>
    %14 = arith.addf %11, %13 : vector<40x128xf32>
    %c0_11 = arith.constant 0 : index
    %c0_12 = arith.constant 0 : index
    %15 = vector.load %arg6[%c0_11, %c0_12] : memref<40x128xf32, #tpu.memory_space<vmem>>, vector<40x128xf32>
    tpu.vector_store %arg6[%c0_11, %c0_12], %14 {strides = array<i32>} : memref<40x128xf32, #tpu.memory_space<vmem>>, vector<40x128xf32>,
    return
  }
  func.func @transform_0(%arg0: i32) -> (i32, i32) {
    %c0_i32 = arith.constant 0 : i32
    %c0_i32_0 = arith.constant 0 : i32
    return %arg0, %c0_i32 : i32, i32
  }
  func.func @transform_1(%arg0: i32) -> (i32, i32) {
    %c0_i32 = arith.constant 0 : i32
    %c0_i32_0 = arith.constant 0 : i32
    %c0_i32_1 = arith.constant 0 : i32
    return %c0_i32, %c0_i32_0 : i32, i32
  }
  func.func @transform_2(%arg0: i32) -> (i32, i32) {
    %c0_i32 = arith.constant 0 : i32
    %c0_i32_0 = arith.constant 0 : i32
    %c0_i32_1 = arith.constant 0 : i32
    return %c0_i32, %c0_i32_0 : i32, i32
  }
  func.func @transform_3(%arg0: i32) -> (i32, i32) {
    %c0_i32 = arith.constant 0 : i32
    %c0_i32_0 = arith.constant 0 : i32
    %c0_i32_1 = arith.constant 0 : i32
    return %c0_i32, %c0_i32_0 : i32, i32
  }
  func.func @transform_4(%arg0: i32) -> (i32, i32) {
    %c0_i32 = arith.constant 0 : i32
    %c0_i32_0 = arith.constant 0 : i32
    %c0_i32_1 = arith.constant 0 : i32
    return %c0_i32, %c0_i32_0 : i32, i32
  }
  func.func @transform_5(%arg0: i32) -> (i32, i32) {
    %c0_i32 = arith.constant 0 : i32
    %c0_i32_0 = arith.constant 0 : i32
    return %arg0, %c0_i32 : i32, i32
  }
}

</mosaic_0001>

<bundles_post_ra>
// kernel: tpu_custom_call.1
= control target key start
LH: loop header
LB: loop body
LE: loop exit
PB: predicated region body
PF: predicated region fallthrough
CT: control target
= control target key end

     0   :  { %10 = vsyncpa [#allocation3], 0  ;;  %s4736_s0 = inlined_call_operand.hbm [shape: f32[65,512], index: 0, kind: input, shape index: {}]   ;;  %s4737_s1 = inlined_call_operand.hbm [shape: bf16[512,1024], index: 1, kind: input, shape index: {}]   ;;  %s4738_s2 = inlined_call_operand.hbm [shape: f32[1,1024], index: 2, kind: input, shape index: {}]   ;;  %s4739_s3 = inlined_call_operand.hbm [shape: bf16[1024,128], index: 3, kind: input, shape index: {}]   ;;  %s4740_s4 = inlined_call_operand.vmem [shape: f32[1,128], index: 4, kind: input, shape index: {}]   ;;  %s4741_s5 = inlined_call_operand.hbm [shape: f32[65,128], index: 5, kind: output, shape index: {}]  }
   0x1   :  { %12 = vsyncpa [#allocation3 + $0x1], 0 }
   0x2   :  { %13 = vsyncpa [#allocation6], 0 }
   0x3   :  { %14 = vsyncpa [#allocation9], 0 }
   0x4   :  { %15 = vsyncpa [#allocation4], 0 }
   0x5   :  { %17 = vsyncpa [#allocation4 + $0x1], 0  ;;  %s4287_s18 = smov 0   ;;  %s4289_s19 = smov 0  }
   0x6   :  { %s4291_s20 = smov 0   ;;  %s4293_s21 = smov 0  }
   0x7 LB: > { %s4308_s22 = sadd.s32 4294967295, %s4242_s21   ;;  %s3337_s23 = sadd.s32 4294967294, %s4242_s21   ;;  %s4242_s21 = sphi %s4293_s21, %s4765_s21   ;;  %s4238_s20 = sphi %s4291_s20, %s4769_s20   ;;  %s4234_s19 = sphi %s4289_s19, %s4768_s19   ;;  %s4230_s18 = sphi %s4287_s18, %s4767_s18  }
   0x8   : > { %s4312_s24 = sadd.s32 1, %s4242_s21   ;;  %s30_s25 = sadd.s32 1, %s4238_s20 }
   0x9   : > { %4747 = sst [smem:[#allocation15_spill]] %s4312_s24  ;;  %s27_s26 = ssub.s32 %s4242_s21, %s4312_s24 }
   0xa   : > { %p37_p0 = scmp.ne.s32.totalorder %s4238_s20, %s4234_s19  ;;  %p28_p1 = scmp.eq.s32.totalorder %s27_s26, 0 }
   0xb   : > { %p38_p2 = scmp.eq.s32.totalorder %s4242_s21, 0  ;;  %p43_p3 = scmp.ne.s32.totalorder %s4234_s19, %s4230_s18 }
   0xc   : > { %p4742_p4 = scmp.eq.s32.totalorder %s4308_s22, 0  ;;  %p151_p7 = scmp.eq.s32.totalorder %s4308_s22, 1 }
   0xd   : > { %s4324_s27 = scalar_select %p28_p1, %s4238_s20, %s30_s25  }
   0xe   : > { %p4326_p5 = por %p38_p2, %p37_p0  ;;  %p4332_p6 = por %p4742_p4, %p43_p3 }
   0xf   : > { %4748 = sst [smem:[#allocation16_spill]] %s4324_s27  ;;  %p157_p8 = scmp.eq.s32.totalorder %s3337_s23, 1 }
  0x10   : > { %s4749_s28 = scalar_select %p4326_p5, 1, 0 }
  0x11   : > { %s4750_s29 = scalar_select %p4332_p6, 1, 0 }
  0x12   : > { %p3338_p9 = scmp.ge.s32.totalorder %s4242_s21, 1  ;;  %p164_p10 = scmp.lt.s32.totalorder %s4242_s21, 3 }
  0x13   : > { %p4339_p11 = por %p151_p7, %p37_p0  ;;  %p4343_p12 = por %p157_p8, %p43_p3 }
  0x14   : > { %p4347_p13 = pnand %p3338_p9, %p164_p10  ;;  %s4244_s8 = smov [#allocation5]  }
  0x15   : > { %s4751_s30 = scalar_select %p4339_p11, 1, 0 }
  0x16   : > { %s4752_s6 = scalar_select %p4343_p12, 1, 0 }
  0x17   : > { %s4753_s7 = scalar_select %p4347_p13, 1, 0 }
  0x18   : > { %p3928_p1 = pneg %p4347_p13  ;;  %s176_s9 = sshll.u32 %s4244_s8, 4  ;;  %s177_s9 = int_to_ptr.vmem [resolvable:$true] %s176_s9 }
  0x19   : > { %s4245_s11 = smov [#allocation7]   ;;  %s4056_s15 = scalar_lea.hbm %s4737_s1, 32768 }
  0x1a   : > { %p4355_p2 = pnand %p3928_p1, %p4742_p4  ;;  %s190_s12 = sshll.u32 %s4245_s11, 4  ;;  %s4359_s12 = int_to_ptr.vmem [resolvable:$true] %s190_s12 }
  0x1b   : > { %p4057_p0 = scmp.ne.s32.totalorder %s4737_s1, %s4056_s15  ;;  %p4063_p9 = scmp.lt.u32.totalorder %s4056_s15, %s4737_s1 }
  0x1c   : > { %p4369_p3 = pneg %p4355_p2 }
  0x1e   : > { %p4059_p7 = pnand %p4369_p3, %p4057_p0 }
  0x20   : > { %p4060_p8 = pneg %p4059_p7 }
  0x22   : > { %p4065_p10 = pnand %p4063_p9, %p4060_p8 }
  0x24   : > { %4068 = shalt.err (!%p4065_p10)
}
  0x25   : > { %s4069_s8 = scalar_lea.vmem %s177_s9, 32768  ;;  %p4077_p11 = scmp.lt.s32.totalorder %s177_s9, %s177_s9 }
  0x26   : > { %p4070_p1 = scmp.ne.s32.totalorder %s177_s9, %s4069_s8  ;;  %p4078_p6 = scmp.lt.s32.totalorder %s4069_s8, %s4069_s8 }
  0x28   : > { %p4072_p4 = pnand %p4070_p1, %p4369_p3  ;;  %p4079_p13 = por %p4078_p6, %p4077_p11 }
  0x2a   : > { %p4073_p12 = pneg %p4072_p4 }
  0x2c   : > { %p4080_p5 = pnand %p4079_p13, %p4073_p12 }
  0x2e   : > { %4083 = shalt.err (!%p4080_p5)
}
  0x2f   : > { %s4246_s11 = smov 512   ;;  %s4247_s13 = smov 32  }
  0x30   : > { %3931 = dma.hbm_to_vmem [thread:$0]  (!%p4355_p2), %s4737_s1, 32768, %s177_s9, [#allocation6], %s4246_s11, %s4246_s11, %s4247_s13  }
  0x31   : > { %s4084_s25 = scalar_lea.hbm %s4738_s2, 128 }
  0x32   : > { %p4085_p4 = scmp.ne.s32.totalorder %s4738_s2, %s4084_s25  ;;  %p4091_p11 = scmp.lt.u32.totalorder %s4084_s25, %s4738_s2 }
  0x34   : > { %p4087_p6 = pnand %p4085_p4, %p4369_p3 }
  0x36   : > { %p4088_p5 = pneg %p4087_p6 }
  0x38   : > { %p4093_p12 = pnand %p4091_p11, %p4088_p5 }
  0x3a   : > { %4096 = shalt.err (!%p4093_p12)
}
  0x3b   : > { %s4097_s9 = scalar_lea.vmem %s4359_s12, 128  ;;  %p4105_p8 = scmp.lt.s32.totalorder %s4359_s12, %s4359_s12 }
  0x3c   : > { %p4098_p13 = scmp.ne.s32.totalorder %s4359_s12, %s4097_s9  ;;  %p4106_p9 = scmp.lt.s32.totalorder %s4097_s9, %s4097_s9 }
  0x3e   : > { %p4100_p0 = pnand %p4098_p13, %p4369_p3  ;;  %p4107_p10 = por %p4106_p9, %p4105_p8 }
  0x40   : > { %p4101_p7 = pneg %p4100_p0 }
  0x42   : > { %p4108_p1 = pnand %p4107_p10, %p4101_p7 }
  0x44   : > { %4111 = shalt.err (!%p4108_p1)
}
  0x45   : > { %3934 = dma.hbm_to_vmem [thread:$0]  (!%p4355_p2), %s4738_s2, 128, %s4359_s12, [#allocation6]  }
  0x46   : > { %s4248_s11 = smov [#allocation8]   ;;  %s4112_s16 = scalar_lea.hbm %s4739_s3, 8192 }
  0x47   : > { %s200_s13 = sshll.u32 %s4248_s11, 4  ;;  %p4113_p4 = scmp.ne.s32.totalorder %s4739_s3, %s4112_s16  ;;  %s201_s13 = int_to_ptr.vmem [resolvable:$true] %s200_s13 }
  0x48   : > { %p4119_p11 = scmp.lt.u32.totalorder %s4112_s16, %s4739_s3 }
  0x49   : > { %p4115_p6 = pnand %p4113_p4, %p4369_p3 }
  0x4b   : > { %p4116_p5 = pneg %p4115_p6 }
  0x4d   : > { %p4121_p12 = pnand %p4119_p11, %p4116_p5 }
  0x4f   : > { %4124 = shalt.err (!%p4121_p12)
}
  0x50   : > { %s4125_s12 = scalar_lea.vmem %s201_s13, 8192  ;;  %p4133_p8 = scmp.lt.s32.totalorder %s201_s13, %s201_s13 }
  0x51   : > { %p4126_p13 = scmp.ne.s32.totalorder %s201_s13, %s4125_s12  ;;  %p4134_p9 = scmp.lt.s32.totalorder %s4125_s12, %s4125_s12 }
  0x53   : > { %p4128_p0 = pnand %p4126_p13, %p4369_p3  ;;  %p4135_p10 = por %p4134_p9, %p4133_p8 }
  0x55   : > { %p4129_p7 = pneg %p4128_p0 }
  0x57   : > { %p4136_p1 = pnand %p4135_p10, %p4129_p7 }
  0x59   : > { %4139 = shalt.err (!%p4136_p1)
}
  0x5a   : > { %s4249_s9 = smov 64   ;;  %s4250_s24 = smov 4  }
  0x5b   : > { %3937 = dma.hbm_to_vmem [thread:$0]  (!%p4355_p2), %s4739_s3, 8192, %s201_s13, [#allocation9], %s4249_s9, %s4249_s9, %s4250_s24  }
  0x5c   : > { %p3342_p4 = scmp.ge.s32.totalorder %s4242_s21, 2 }
  0x5d   : > { %p4756_p3 = scmp.ne.s32.totalorder (!%p3342_p4), %s4749_s28, 0 }
  0x5e   : > { %213 = sbr.rel (%p3342_p4) target bundleno = 136 (0x88), region = 32 }
  0x65   : > { %216 = sbr.rel (!%p4756_p3) target bundleno = 136 (0x88), region = 36  ;;  %s217_s23 = sand.u32 (%p4756_p3), 1, %s4238_s20  }
  0x66   : > { %s222_s14 = smul.u32 (%p4756_p3), 5, %s4242_s21  ;;  %s4436_s17 = scalar_lea.sflag (%p4756_p3), [#allocation3], %s217_s23 }
  0x67   : > { %s3911_s15 = smul.u32 (%p4756_p3), 160, %s217_s23 }
  0x68   : > { %s223_s16 = ssub.s32 (%p4756_p3), 9, %s222_s14 }
  0x69   : > { %p224_p6 = scmp.lt.s32.totalorder (%p4756_p3), %s223_s16, 5  ;;  %s221_s25 = scalar_lea.vmem (%p4756_p3), [#allocation2], %s3911_s15 }
  0x6c   : > { %s4771_s16 = smov (!%p224_p6, %s223_s16), 5 }
  0x6d   : > { %s4433_s10 = sshll.u32 %s4771_s16, 9 }
  0x6e   : > { %s229_s13 = ssub.s32 2560, %s4433_s10 }
  0x6f   : > { %230 = vsyncadd %s4436_s17, %s229_s13  ;;  %p3345_p2 = scmp.ne.s32.totalorder %s4433_s10, 0  ;;  %s3686_s28 = smul.u32 2560, %s4242_s21 }
  0x70   : > { %s236_s26 = sshll.u32 %s221_s25, 4  ;;  %s4144_s23 = scalar_lea.hbm %s4736_s0, 4608  ;;  %s4446_s26 = int_to_ptr.vmem [resolvable:$true] %s236_s26 }
  0x71   : > { %s4444_s9 = scalar_lea.hbm %s4736_s0, %s3686_s28 }
  0x72   : > { %s4140_s24 = scalar_lea.hbm %s4444_s9, %s4433_s10  ;;  %p4145_p13 = scmp.lt.u32.totalorder %s4444_s9, %s4736_s0 }
  0x73   : > { %p4141_p5 = scmp.ne.s32.totalorder %s4444_s9, %s4140_s24  ;;  %p4146_p0 = scmp.lt.u32.totalorder %s4144_s23, %s4140_s24 }
  0x74   : > { %p4148_p8 = scmp.lt.u32.totalorder %s4140_s24, %s4444_s9 }
  0x75   : > { %p4142_p11 = pnand %p4141_p5, %p3345_p2  ;;  %p4147_p7 = por %p4146_p0, %p4145_p13 }
  0x77   : > { %p4143_p12 = pneg %p4142_p11  ;;  %p4149_p9 = por %p4148_p8, %p4147_p7 }
  0x79   : > { %p4150_p10 = pnand %p4149_p9, %p4143_p12 }
  0x7b   : > { %4153 = shalt.err (!%p4150_p10)
}
  0x7c   : > { %s4154_s16 = scalar_lea.vmem %s4446_s26, %s4433_s10  ;;  %s4251_s13 = smov [#allocation2]  }
  0x7d   : > { %p4155_p1 = scmp.ne.s32.totalorder %s4446_s26, %s4154_s16  ;;  %s4158_s25 = sshll.u32 %s4251_s13, 4  ;;  %s4159_s25 = int_to_ptr.vmem [resolvable:$false] %s4158_s25 }
  0x7e   : > { %s4160_s28 = scalar_lea.vmem %s4159_s25, 5120  ;;  %p4161_p5 = scmp.lt.s32.totalorder %s4446_s26, %s4159_s25 }
  0x7f   : > { %p4156_p3 = pnand %p4155_p1, %p3345_p2  ;;  %p4162_p11 = scmp.lt.s32.totalorder %s4160_s28, %s4154_s16 }
  0x81   : > { %p4157_p6 = pneg %p4156_p3  ;;  %p4163_p13 = por %p4162_p11, %p4161_p5 }
  0x83   : > { %p4164_p0 = pnand %p4163_p13, %p4157_p6 }
  0x85   : > { %4167 = shalt.err (!%p4164_p0)
}
  0x86   : > { %s4252_s8 = smov 512   ;;  %s4253_s12 = smov 32  }
  0x87   : > { %242 = dma.hbm_to_vmem [thread:$0]  (%p3345_p2), %s4444_s9, %s4433_s10, %s4446_s26, %s4436_s17, %s4252_s8, %s4252_s8, %s4253_s12  }
  0x88 PF: > { %p4757_p12 = scmp.ne.s32.totalorder %s4753_s7, 0 }
  0x89   : > { %s4476_s24 = sand.u32 (!%p4757_p12), 1, %s4234_s19   ;;  %p4758_p7 = scmp.ne.s32.totalorder (!%p4757_p12), %s4750_s29, 0 }
  0x8a   : > { %248 = sbr.rel (%p4757_p12) target bundleno = 898 (0x382), region = 40  ;;  %s251_s11 = scalar_lea.sflag (!%p4757_p12), [#allocation3], %s4476_s24 }
  0x8b   : > { %s3912_s27 = smul.u32 (!%p4757_p12), 160, %s4476_s24 }
  0x8d   : > { %s4480_s23 = scalar_lea.vmem (!%p4757_p12), [#allocation2], %s3912_s27 }
  0x91   : > { %4213 = dma.done.wait (%p4758_p7), %s251_s11, 2560  }
  0x92   : > { %4215 = vsyncadd (%p4758_p7), %s251_s11, 4294964736  ;;  %p4759_p2 = scmp.eq.s32.totalorder %s4308_s22, 0 }
  0x94   : > { %4217 = dma.done.wait (%p4759_p2), [#allocation6], 32896   ;;  %p4760_p8 = pmov %p4759_p2 }
  0x95   : > { %p4761_p9 = pmov %p4759_p2 }
  0x96   : > { %4219 = vsyncadd (%p4760_p8), [#allocation6], 4294934400 }
  0x97   : > { %4221 = dma.done.wait (%p4761_p9), [#allocation9], 8192   ;;  %p4762_p10 = pmov %p4759_p2 }
  0x98   : > { %v337_v0 = vld [vmem:[#allocation5] sm:$0xff]  ;;  %v338_v2 = vld [vmem:[#allocation5 + $0x8] sm:$0xff]  ;;  %s3913_s10 = smul.u32 40, %s4476_s24  ;;  %s3216_s26 = scalar_lea.sflag [#allocation4], %s4476_s24 }
  0x99   : > { %4223 = vsyncadd (%p4762_p10), [#allocation9], 4294959104  ;;  %v341_v1 = vld [vmem:[#allocation5 + $0x20] sm:$0xff]  ;;  %v342_v4 = vld [vmem:[#allocation5 + $0x28] sm:$0xff]  ;;  %p4763_p1 = scmp.ne.s32.totalorder %s4751_s30, 0 }
  0x9a   : > { %v3355_v3 = vcombine.high %v337_v0, %v341_v1  ;;  %v3354_v5 = vcombine.low %v337_v0, %v341_v1  ;;  %v345_v6 = vld [vmem:[#allocation5 + $0x40] sm:$0xff]  ;;  %v3357_v8 = vcombine.high %v338_v2, %v342_v4  ;;  %v3356_v9 = vcombine.low %v338_v2, %v342_v4  ;;  %v346_v11 = vld [vmem:[#allocation5 + $0x48] sm:$0xff]  ;;  %s4666_s17 = scalar_lea.vmem [#allocation10], %s3913_s10  ;;  %s3223_s9 = smul.u32 (%p4763_p1), 5, %s4308_s22 }
  0x9b   : > { %v349_v7 = vld [vmem:[#allocation5 + $0x60] sm:$0xff]  ;;  %v350_v12 = vld [vmem:[#allocation5 + $0x68] sm:$0xff] }
  0x9c   : > { %v3363_v10 = vcombine.high %v345_v6, %v349_v7  ;;  %v353_v13 = vld [vmem:[#allocation5 + $0x80] sm:$0xff]  ;;  %1915 = vmatprep.subr.bf16.mxu0 %v3355_v3  ;;  %v3365_v14 = vcombine.high %v346_v11, %v350_v12  ;;  %v354_v16 = vld [vmem:[#allocation5 + $0x88] sm:$0xff]  ;;  %2037 = vmatprep.subr.bf16.mxu1 %v3357_v8  ;;  %v3362_v18 = vcombine.low %v345_v6, %v349_v7  ;;  %s3224_s14 = ssub.s32 (%p4763_p1), 9, %s3223_s9 }
  0x9d   : > { %v357_v15 = vld [vmem:[#allocation5 + $0xa0] sm:$0xff]  ;;  %v358_v17 = vld [vmem:[#allocation5 + $0xa8] sm:$0xff]  ;;  %1916 = vmatpush1.bf16.msra.mxu0 %v3354_v5  ;;  %2038 = vmatpush1.bf16.msra.mxu1 %v3356_v9  ;;  %v3364_v19 = vcombine.low %v346_v11, %v350_v12  ;;  %p3225_p3 = scmp.lt.s32.totalorder (%p4763_p1), %s3224_s14, 5 }
  0x9e   : > { %1917 = vmatprep.subr.bf16.mxu0 %v3363_v10  ;;  %v3371_v20 = vcombine.high %v353_v13, %v357_v15  ;;  %2039 = vmatprep.subr.bf16.mxu1 %v3365_v14  ;;  %v3373_v21 = vcombine.high %v354_v16, %v358_v17  ;;  %v361_v22 = vld [vmem:[#allocation5 + $0xc0] sm:$0xff]  ;;  %v362_v24 = vld [vmem:[#allocation5 + $0xc8] sm:$0xff]  ;;  %v3370_v26 = vcombine.low %v353_v13, %v357_v15 }
  0x9f   : > { %v365_v23 = vld [vmem:[#allocation5 + $0xe0] sm:$0xff]  ;;  %v366_v25 = vld [vmem:[#allocation5 + $0xe8] sm:$0xff]  ;;  %v3372_v27 = vcombine.low %v354_v16, %v358_v17 }
  0xa0   : > { %v3379_v28 = vcombine.high %v361_v22, %v365_v23  ;;  %v3381_v29 = vcombine.high %v362_v24, %v366_v25  ;;  %v369_v30 = vld [vmem:[#allocation5 + $0x100] sm:$0xff]  ;;  %v370_v32 = vld [vmem:[#allocation5 + $0x108] sm:$0xff]  ;;  %v3378_v34 = vcombine.low %v361_v22, %v365_v23  ;;  %v3380_v35 = vcombine.low %v362_v24, %v366_v25 }
  0xa1   : > { %1918 = vmatpush1.bf16.msra.mxu0 %v3362_v18  ;;  %2040 = vmatpush1.bf16.msra.mxu1 %v3364_v19  ;;  %v373_v31 = vld [vmem:[#allocation5 + $0x120] sm:$0xff]  ;;  %v374_v33 = vld [vmem:[#allocation5 + $0x128] sm:$0xff] }
  0xa2   : > { %1919 = vmatprep.subr.bf16.mxu0 %v3371_v20  ;;  %2041 = vmatprep.subr.bf16.mxu1 %v3373_v21  ;;  %v3387_v36 = vcombine.high %v369_v30, %v373_v31  ;;  %v3389_v37 = vcombine.high %v370_v32, %v374_v33  ;;  %v377_v38 = vld [vmem:[#allocation5 + $0x140] sm:$0xff]  ;;  %v378_v40 = vld [vmem:[#allocation5 + $0x148] sm:$0xff]  ;;  %v3386_v42 = vcombine.low %v369_v30, %v373_v31 }
  0xa3   : > { %v381_v39 = vld [vmem:[#allocation5 + $0x160] sm:$0xff]  ;;  %v382_v41 = vld [vmem:[#allocation5 + $0x168] sm:$0xff]  ;;  %v3388_v43 = vcombine.low %v370_v32, %v374_v33 }
  0xa4   : > { %v3395_v44 = vcombine.high %v377_v38, %v381_v39  ;;  %v3397_v45 = vcombine.high %v378_v40, %v382_v41  ;;  %v385_v46 = vld [vmem:[#allocation5 + $0x180] sm:$0xff]  ;;  %v386_v48 = vld [vmem:[#allocation5 + $0x188] sm:$0xff]  ;;  %v3394_v50 = vcombine.low %v377_v38, %v381_v39  ;;  %v3396_v51 = vcombine.low %v378_v40, %v382_v41 }
  0xa5   : > { %1920 = vmatpush1.bf16.msra.mxu0 %v3370_v26  ;;  %2042 = vmatpush1.bf16.msra.mxu1 %v3372_v27  ;;  %v389_v47 = vld [vmem:[#allocation5 + $0x1a0] sm:$0xff]  ;;  %v390_v49 = vld [vmem:[#allocation5 + $0x1a8] sm:$0xff] }
  0xa6   : > { %1921 = vmatprep.subr.bf16.mxu0 %v3379_v28  ;;  %2043 = vmatprep.subr.bf16.mxu1 %v3381_v29  ;;  %v3403_v52 = vcombine.high %v385_v46, %v389_v47  ;;  %v306_v53 = vld [vmem:[%s4480_s23 + $0x8] sm:$0xff]  ;;  %v3405_v55 = vcombine.high %v386_v48, %v390_v49  ;;  %v393_v56 = vld [vmem:[#allocation5 + $0x1c0] sm:$0xff]  ;;  %v3402_v61 = vcombine.low %v385_v46, %v389_v47 }
  0xa7   : > { %v310_v54 = vld [vmem:[%s4480_s23 + $0x28] sm:$0xff]  ;;  %v397_v57 = vld [vmem:[#allocation5 + $0x1e0] sm:$0xff]  ;;  %v3404_v62 = vcombine.low %v386_v48, %v390_v49 }
  0xa8   : > { %v4496_v58 = vpack.c.bf16 %v310_v54, %v306_v53  ;;  %v394_v59 = vld [vmem:[#allocation5 + $0x1c8] sm:$0xff]  ;;  %v3411_v63 = vcombine.high %v393_v56, %v397_v57  ;;  %v401_v1 = vld [vmem:[#allocation5 + $0x200] sm:$0xff]  ;;  %v3410_v5 = vcombine.low %v393_v56, %v397_v57 }
  0xa9   : > { %1922 = vmatpush1.bf16.msra.mxu0 %v3378_v34  ;;  %2044 = vmatpush1.bf16.msra.mxu1 %v3380_v35  ;;  %v398_v60 = vld [vmem:[#allocation5 + $0x1e8] sm:$0xff]  ;;  %v405_v2 = vld [vmem:[#allocation5 + $0x220] sm:$0xff] }
  0xaa   : > { %1923 = vmatprep.subr.bf16.mxu0 %v3387_v36  ;;  %2045 = vmatprep.subr.bf16.mxu1 %v3389_v37  ;;  %v3413_v0 = vcombine.high %v394_v59, %v398_v60  ;;  %v402_v3 = vld [vmem:[#allocation5 + $0x208] sm:$0xff]  ;;  %v3412_v6 = vcombine.low %v394_v59, %v398_v60  ;;  %v3419_v7 = vcombine.high %v401_v1, %v405_v2  ;;  %v409_v9 = vld [vmem:[#allocation5 + $0x240] sm:$0xff] }
  0xab   : > { %1947 = vmatprep.mubr.bf16.mxu0 %v4496_v58  ;;  %2069 = vmatprep.mubr.bf16.mxu1 %v4496_v58  ;;  %v406_v4 = vld [vmem:[#allocation5 + $0x228] sm:$0xff]  ;;  %v413_v10 = vld [vmem:[#allocation5 + $0x260] sm:$0xff]  ;;  %v3418_v13 = vcombine.low %v401_v1, %v405_v2 }
  0xac   : > { %v3421_v8 = vcombine.high %v402_v3, %v406_v4  ;;  %v410_v11 = vld [vmem:[#allocation5 + $0x248] sm:$0xff]  ;;  %v3420_v14 = vcombine.low %v402_v3, %v406_v4  ;;  %v3427_v15 = vcombine.high %v409_v9, %v413_v10  ;;  %v417_v17 = vld [vmem:[#allocation5 + $0x280] sm:$0xff]  ;;  %v3426_v21 = vcombine.low %v409_v9, %v413_v10 }
  0xad   : > { %1924 = vmatpush1.bf16.msra.mxu0 %v3386_v42  ;;  %2046 = vmatpush1.bf16.msra.mxu1 %v3388_v43  ;;  %v414_v12 = vld [vmem:[#allocation5 + $0x268] sm:$0xff]  ;;  %v421_v18 = vld [vmem:[#allocation5 + $0x2a0] sm:$0xff] }
  0xae   : > { %1925 = vmatprep.subr.bf16.mxu0 %v3395_v44  ;;  %2047 = vmatprep.subr.bf16.mxu1 %v3397_v45  ;;  %v3429_v16 = vcombine.high %v410_v11, %v414_v12  ;;  %v418_v19 = vld [vmem:[#allocation5 + $0x288] sm:$0xff]  ;;  %v3428_v22 = vcombine.low %v410_v11, %v414_v12  ;;  %v3435_v23 = vcombine.high %v417_v17, %v421_v18  ;;  %v425_v25 = vld [vmem:[#allocation5 + $0x2c0] sm:$0xff] }
  0xaf   : > { %v422_v20 = vld [vmem:[#allocation5 + $0x2a8] sm:$0xff]  ;;  %v429_v26 = vld [vmem:[#allocation5 + $0x2e0] sm:$0xff]  ;;  %v3434_v29 = vcombine.low %v417_v17, %v421_v18 }
  0xb0   : > { %v3437_v24 = vcombine.high %v418_v19, %v422_v20  ;;  %v426_v27 = vld [vmem:[#allocation5 + $0x2c8] sm:$0xff]  ;;  %v3436_v30 = vcombine.low %v418_v19, %v422_v20  ;;  %v3443_v31 = vcombine.high %v425_v25, %v429_v26  ;;  %v433_v33 = vld [vmem:[#allocation5 + $0x300] sm:$0xff]  ;;  %v3442_v37 = vcombine.low %v425_v25, %v429_v26 }
  0xb1   : > { %1926 = vmatpush1.bf16.msra.mxu0 %v3394_v50  ;;  %2048 = vmatpush1.bf16.msra.mxu1 %v3396_v51  ;;  %v430_v28 = vld [vmem:[#allocation5 + $0x2e8] sm:$0xff]  ;;  %v437_v34 = vld [vmem:[#allocation5 + $0x320] sm:$0xff] }
  0xb2   : > { %1927 = vmatprep.subr.bf16.mxu0 %v3403_v52  ;;  %2049 = vmatprep.subr.bf16.mxu1 %v3405_v55  ;;  %v3445_v32 = vcombine.high %v426_v27, %v430_v28  ;;  %v434_v35 = vld [vmem:[#allocation5 + $0x308] sm:$0xff]  ;;  %v3444_v38 = vcombine.low %v426_v27, %v430_v28  ;;  %v3451_v39 = vcombine.high %v433_v33, %v437_v34  ;;  %v441_v41 = vld [vmem:[#allocation5 + $0x340] sm:$0xff] }
  0xb3   : > { %v438_v36 = vld [vmem:[#allocation5 + $0x328] sm:$0xff]  ;;  %v445_v42 = vld [vmem:[#allocation5 + $0x360] sm:$0xff]  ;;  %v3450_v45 = vcombine.low %v433_v33, %v437_v34 }
  0xb4   : > { %v3453_v40 = vcombine.high %v434_v35, %v438_v36  ;;  %v442_v43 = vld [vmem:[#allocation5 + $0x348] sm:$0xff]  ;;  %v3452_v46 = vcombine.low %v434_v35, %v438_v36  ;;  %v3459_v47 = vcombine.high %v441_v41, %v445_v42  ;;  %v449_v49 = vld [vmem:[#allocation5 + $0x380] sm:$0xff]  ;;  %v3458_v53 = vcombine.low %v441_v41, %v445_v42 }
  0xb5   : > { %1928 = vmatpush1.bf16.msra.mxu0 %v3402_v61  ;;  %2050 = vmatpush1.bf16.msra.mxu1 %v3404_v62  ;;  %v446_v44 = vld [vmem:[#allocation5 + $0x368] sm:$0xff]  ;;  %v453_v50 = vld [vmem:[#allocation5 + $0x3a0] sm:$0xff] }
  0xb6   : > { %1929 = vmatprep.subr.bf16.mxu0 %v3411_v63  ;;  %2051 = vmatprep.subr.bf16.mxu1 %v3413_v0  ;;  %v3461_v48 = vcombine.high %v442_v43, %v446_v44  ;;  %v450_v51 = vld [vmem:[#allocation5 + $0x388] sm:$0xff]  ;;  %v3460_v54 = vcombine.low %v442_v43, %v446_v44  ;;  %v3467_v55 = vcombine.high %v449_v49, %v453_v50  ;;  %v457_v57 = vld [vmem:[#allocation5 + $0x3c0] sm:$0xff] }
  0xb7   : > { %v454_v52 = vld [vmem:[#allocation5 + $0x3a8] sm:$0xff]  ;;  %v461_v59 = vld [vmem:[#allocation5 + $0x3e0] sm:$0xff]  ;;  %v3466_v62 = vcombine.low %v449_v49, %v453_v50 }
  0xb8   : > { %v3469_v56 = vcombine.high %v450_v51, %v454_v52  ;;  %v458_v60 = vld [vmem:[#allocation5 + $0x3c8] sm:$0xff]  ;;  %v3468_v63 = vcombine.low %v450_v51, %v454_v52  ;;  %v3475_v0 = vcombine.high %v457_v57, %v461_v59  ;;  %v465_v2 = vld [vmem:[#allocation5 + $0x400] sm:$0xff] }
  0xb9   : > { %1930 = vmatpush1.bf16.msra.mxu0 %v3410_v5  ;;  %2052 = vmatpush1.bf16.msra.mxu1 %v3412_v6  ;;  %v462_v61 = vld [vmem:[#allocation5 + $0x3e8] sm:$0xff]  ;;  %v469_v3 = vld [vmem:[#allocation5 + $0x420] sm:$0xff]  ;;  %v3474_v6 = vcombine.low %v457_v57, %v461_v59  ;;  %v308_v57 = vld [vmem:[%s4480_s23 + $0x18] sm:$0xff] }
  0xba   : > { %1931 = vmatprep.subr.bf16.mxu0 %v3419_v7  ;;  %2053 = vmatprep.subr.bf16.mxu1 %v3421_v8  ;;  %v3477_v1 = vcombine.high %v458_v60, %v462_v61  ;;  %v466_v4 = vld [vmem:[#allocation5 + $0x408] sm:$0xff]  ;;  %v305_v7 = vld [vmem:[%s4480_s23] sm:$0xff]  ;;  %v3476_v9 = vcombine.low %v458_v60, %v462_v61  ;;  %v3483_v10 = vcombine.high %v465_v2, %v469_v3  ;;  %v312_v60 = vld [vmem:[%s4480_s23 + $0x38] sm:$0xff] }
  0xbb   : > { %v470_v5 = vld [vmem:[#allocation5 + $0x428] sm:$0xff]  ;;  %v309_v8 = vld [vmem:[%s4480_s23 + $0x20] sm:$0xff]  ;;  %v3482_v19 = vcombine.low %v465_v2, %v469_v3 }
  0xbc   : > { %v3485_v11 = vcombine.high %v466_v4, %v470_v5  ;;  %v473_v12 = vld [vmem:[#allocation5 + $0x440] sm:$0xff]  ;;  %v314_v17 = vld [vmem:[%s4480_s23 + $0x48] sm:$0xff]  ;;  %v3484_v20 = vcombine.low %v466_v4, %v470_v5 }
  0xbd   : > { %1932 = vmatpush1.bf16.msra.mxu0 %v3418_v13  ;;  %2054 = vmatpush1.bf16.msra.mxu1 %v3420_v14  ;;  %v477_v13 = vld [vmem:[#allocation5 + $0x460] sm:$0xff]  ;;  %v474_v14 = vld [vmem:[#allocation5 + $0x448] sm:$0xff] }
  0xbe   : > { %1933 = vmatprep.subr.bf16.mxu0 %v3427_v15  ;;  %2055 = vmatprep.subr.bf16.mxu1 %v3429_v16  ;;  %v4502_v15 = vpack.c.bf16 %v309_v8, %v305_v7  ;;  %v478_v16 = vld [vmem:[#allocation5 + $0x468] sm:$0xff]  ;;  %v3490_v28 = vcombine.low %v473_v12, %v477_v13  ;;  %v489_v34 = vld [vmem:[#allocation5 + $0x4c0] sm:$0xff] }
  0xbf   : > { %v318_v18 = vld [vmem:[%s4480_s23 + $0x68] sm:$0xff]  ;;  %v493_v35 = vld [vmem:[#allocation5 + $0x4e0] sm:$0xff] }
  0xc0   : > { %v4506_v25 = vpack.c.bf16 %v318_v18, %v314_v17  ;;  %v482_v26 = vld [vmem:[#allocation5 + $0x488] sm:$0xff]  ;;  %v3507_v42 = vcombine.high %v489_v34, %v493_v35  ;;  %v497_v43 = vld [vmem:[#allocation5 + $0x500] sm:$0xff]  ;;  %v3506_v50 = vcombine.low %v489_v34, %v493_v35 }
  0xc1   : > { %1934 = vmatpush1.bf16.msra.mxu0 %v3426_v21  ;;  %2056 = vmatpush1.bf16.msra.mxu1 %v3428_v22  ;;  %v3491_v21 = vcombine.high %v473_v12, %v477_v13  ;;  %v3493_v22 = vcombine.high %v474_v14, %v478_v16  ;;  %v486_v27 = vld [vmem:[#allocation5 + $0x4a8] sm:$0xff]  ;;  %v501_v44 = vld [vmem:[#allocation5 + $0x520] sm:$0xff] }
  0xc2   : > { %1935 = vmatprep.subr.bf16.mxu0 %v3435_v23  ;;  %2057 = vmatprep.subr.bf16.mxu1 %v3437_v24  ;;  %v481_v23 = vld [vmem:[#allocation5 + $0x480] sm:$0xff]  ;;  %v3501_v33 = vcombine.high %v482_v26, %v486_v27  ;;  %v490_v36 = vld [vmem:[#allocation5 + $0x4c8] sm:$0xff]  ;;  %v3500_v41 = vcombine.low %v482_v26, %v486_v27 }
  0xc3   : > { %v485_v24 = vld [vmem:[#allocation5 + $0x4a0] sm:$0xff]  ;;  %v514_v3 = vld [vmem:[#allocation5 + $0x588] sm:$0xff] }
  0xc4   : > { %v321_v49 = vld [vmem:[%s4480_s23 + $0x80] sm:$0xff]  ;;  %v518_v5 = vld [vmem:[#allocation5 + $0x5a8] sm:$0xff] }
  0xc5   : > { %1936 = vmatpush1.bf16.msra.mxu0 %v3434_v29  ;;  %2058 = vmatpush1.bf16.msra.mxu1 %v3436_v30  ;;  %v313_v29 = vld [vmem:[%s4480_s23 + $0x40] sm:$0xff]  ;;  %v4526_v61 = vpack.c.bf16 %v321_v49, %v321_v49  ;;  %v522_v12 = vld [vmem:[#allocation5 + $0x5c8] sm:$0xff]  ;;  %v3533_v13 = vcombine.high %v514_v3, %v518_v5  ;;  %v3532_v17 = vcombine.low %v514_v3, %v518_v5 }
  0xc6   : > { %1937 = vmatprep.subr.bf16.mxu0 %v3443_v31  ;;  %2059 = vmatprep.subr.bf16.mxu1 %v3445_v32  ;;  %v317_v30 = vld [vmem:[%s4480_s23 + $0x60] sm:$0xff]  ;;  %v3492_v31 = vcombine.low %v474_v14, %v478_v16  ;;  %v3499_v32 = vcombine.high %v481_v23, %v485_v24  ;;  %v526_v14 = vld [vmem:[#allocation5 + $0x5e8] sm:$0xff] }
  0xc7   : > { %v505_v51 = vld [vmem:[#allocation5 + $0x540] sm:$0xff]  ;;  %v3540_v26 = vcombine.low %v522_v12, %v526_v14 }
  0xc8   : > { %v509_v52 = vld [vmem:[#allocation5 + $0x560] sm:$0xff] }
  0xc9   : > { %1938 = vmatpush1.bf16.msra.mxu0 %v3442_v37  ;;  %2060 = vmatpush1.bf16.msra.mxu1 %v3444_v38  ;;  %v494_v37 = vld [vmem:[#allocation5 + $0x4e8] sm:$0xff]  ;;  %v4514_v38 = vpack.c.bf16 %v317_v30, %v313_v29  ;;  %v517_v2 = vld [vmem:[#allocation5 + $0x5a0] sm:$0xff]  ;;  %v3522_v7 = vcombine.low %v505_v51, %v509_v52 }
  0xca   : > { %1939 = vmatprep.subr.bf16.mxu0 %v3451_v39  ;;  %2061 = vmatprep.subr.bf16.mxu1 %v3453_v40  ;;  %v322_v39 = vld [vmem:[%s4480_s23 + $0x88] sm:$0xff]  ;;  %v3498_v40 = vcombine.low %v481_v23, %v485_v24  ;;  %v541_v29 = vld [vmem:[#allocation5 + $0x660] sm:$0xff] }
  0xcb   : > { %v534_v23 = vld [vmem:[#allocation5 + $0x628] sm:$0xff] }
  0xcc   : > { %v538_v30 = vld [vmem:[#allocation5 + $0x648] sm:$0xff] }
  0xcd   : > { %1940 = vmatpush1.bf16.msra.mxu0 %v3450_v45  ;;  %2062 = vmatpush1.bf16.msra.mxu1 %v3452_v46  ;;  %v498_v45 = vld [vmem:[#allocation5 + $0x508] sm:$0xff]  ;;  %v3509_v46 = vcombine.high %v490_v36, %v494_v37 }
  0xce   : > { %1941 = vmatprep.subr.bf16.mxu0 %v3459_v47  ;;  %2063 = vmatprep.subr.bf16.mxu1 %v3461_v48  ;;  %v502_v47 = vld [vmem:[#allocation5 + $0x528] sm:$0xff]  ;;  %v4517_v48 = vpack.c.bf16 %v322_v39, %v322_v39 }
  0xcf   : > { %v3517_v59 = vcombine.high %v498_v45, %v502_v47  ;;  %v546_v39 = vld [vmem:[#allocation5 + $0x688] sm:$0xff] }
  0xd1   : > { %1942 = vmatpush1.bf16.msra.mxu0 %v3458_v53  ;;  %2064 = vmatpush1.bf16.msra.mxu1 %v3460_v54  ;;  %v3508_v53 = vcombine.low %v490_v36, %v494_v37  ;;  %v3515_v54 = vcombine.high %v497_v43, %v501_v44  ;;  %v545_v36 = vld [vmem:[#allocation5 + $0x680] sm:$0xff] }
  0xd2   : > { %1943 = vmatprep.subr.bf16.mxu0 %v3467_v55  ;;  %2065 = vmatprep.subr.bf16.mxu1 %v3469_v56  ;;  %v506_v55 = vld [vmem:[#allocation5 + $0x548] sm:$0xff]  ;;  %v549_v37 = vld [vmem:[#allocation5 + $0x6a0] sm:$0xff] }
  0xd3   : > { %v510_v56 = vld [vmem:[#allocation5 + $0x568] sm:$0xff] }
  0xd4   : > { %v3525_v4 = vcombine.high %v506_v55, %v510_v56  ;;  %v3524_v8 = vcombine.low %v506_v55, %v510_v56  ;;  %v565_v55 = vld [vmem:[#allocation5 + $0x720] sm:$0xff]  ;;  %v562_v56 = vld [vmem:[#allocation5 + $0x708] sm:$0xff] }
  0xd5   : > { %1944 = vmatpush1.bf16.msra.mxu0 %v3466_v62  ;;  %2066 = vmatpush1.bf16.msra.mxu1 %v3468_v63  ;;  %v3514_v62 = vcombine.low %v497_v43, %v501_v44  ;;  %v3516_v63 = vcombine.low %v498_v45, %v502_v47  ;;  %v3563_v44 = vcombine.high %v545_v36, %v549_v37  ;;  %v553_v45 = vld [vmem:[#allocation5 + $0x6c0] sm:$0xff]  ;;  %v554_v47 = vld [vmem:[#allocation5 + $0x6c8] sm:$0xff] }
  0xd6   : > { %1945 = vmatprep.subr.bf16.mxu0 %v3475_v0  ;;  %2067 = vmatprep.subr.bf16.mxu1 %v3477_v1  ;;  %v3523_v0 = vcombine.high %v505_v51, %v509_v52  ;;  %v513_v1 = vld [vmem:[#allocation5 + $0x580] sm:$0xff]  ;;  %v3562_v51 = vcombine.low %v545_v36, %v549_v37  ;;  %v351_v36 = vld [vmem:[#allocation5 + $0x70] sm:$0xff] }
  0xd7   : > { %v3530_v16 = vcombine.low %v513_v1, %v517_v2 }
  0xd9   : > { %1946 = vmatpush1.bf16.msra.mxu0 %v3474_v6  ;;  %2068 = vmatpush1.bf16.msra.mxu1 %v3476_v9  ;;  %v4528_v6 = vpack.c.bf16 %v312_v60, %v308_v57  ;;  %v3531_v9 = vcombine.high %v513_v1, %v517_v2  ;;  %v573_v1 = vld [vmem:[#allocation5 + $0x760] sm:$0xff]  ;;  %v570_v2 = vld [vmem:[#allocation5 + $0x748] sm:$0xff] }
  0xda   : > { %1976 = vmatprep.subr.bf16.mxu0 %v3483_v10  ;;  %2098 = vmatprep.subr.bf16.mxu1 %v3485_v11  ;;  %v521_v10 = vld [vmem:[#allocation5 + $0x5c0] sm:$0xff] }
  0xdb   : > { %v525_v11 = vld [vmem:[#allocation5 + $0x5e0] sm:$0xff] }
  0xdc   : > { %1948 = vmatmul.mubr.bf16.vlgmr.msra.gmra.mrb[0].mxu0 %v4502_v15  ;;  %2070 = vmatmul.mubr.bf16.vlgmr.msra.gmra.mrb[0].mxu1 %v4502_v15  ;;  %v3539_v18 = vcombine.high %v521_v10, %v525_v11  ;;  %v3538_v24 = vcombine.low %v521_v10, %v525_v11  ;;  %v581_v10 = vld [vmem:[#allocation5 + $0x7a0] sm:$0xff]  ;;  %v578_v11 = vld [vmem:[#allocation5 + $0x788] sm:$0xff] }
  0xdd   : > { %1977 = vmatpush1.bf16.msra.mxu0 %v3482_v19  ;;  %2099 = vmatpush1.bf16.msra.mxu1 %v3484_v20  ;;  %v529_v19 = vld [vmem:[#allocation5 + $0x600] sm:$0xff] }
  0xde   : > { %1978 = vmatprep.subr.bf16.mxu0 %v3491_v21  ;;  %2100 = vmatprep.subr.bf16.mxu1 %v3493_v22  ;;  %v533_v20 = vld [vmem:[#allocation5 + $0x620] sm:$0xff]  ;;  %v530_v21 = vld [vmem:[#allocation5 + $0x608] sm:$0xff]  ;;  %v3541_v22 = vcombine.high %v522_v12, %v526_v14 }
  0xdf   : > { %1957 = vmatprep.mubr.bf16.mxu0 %v4506_v25  ;;  %2079 = vmatprep.mubr.bf16.mxu1 %v4506_v25  ;;  %v3547_v27 = vcombine.high %v529_v19, %v533_v20  ;;  %v3548_v34 = vcombine.low %v530_v21, %v534_v23 }
  0xe1   : > { %1979 = vmatpush1.bf16.msra.mxu0 %v3490_v28  ;;  %2101 = vmatpush1.bf16.msra.mxu1 %v3492_v31  ;;  %v537_v28 = vld [vmem:[#allocation5 + $0x640] sm:$0xff]  ;;  %v3549_v31 = vcombine.high %v530_v21, %v534_v23 }
  0xe2   : > { %1980 = vmatprep.subr.bf16.mxu0 %v3499_v32  ;;  %2102 = vmatprep.subr.bf16.mxu1 %v3501_v33  ;;  %v542_v32 = vld [vmem:[#allocation5 + $0x668] sm:$0xff]  ;;  %v3546_v33 = vcombine.low %v529_v19, %v533_v20  ;;  %v3555_v35 = vcombine.high %v537_v28, %v541_v29  ;;  %v589_v19 = vld [vmem:[#allocation5 + $0x7e0] sm:$0xff] }
  0xe3   : > { %v3556_v43 = vcombine.low %v538_v30, %v542_v32  ;;  %v586_v20 = vld [vmem:[#allocation5 + $0x7c8] sm:$0xff] }
  0xe4   : > { %1958 = vmatmul.mubr.bf16.gmra.mrb[4].mxu0 %v4514_v38  ;;  %2080 = vmatmul.mubr.bf16.gmra.mrb[4].mxu1 %v4514_v38 }
  0xe5   : > { %1981 = vmatpush1.bf16.msra.mxu0 %v3498_v40  ;;  %2103 = vmatpush1.bf16.msra.mxu1 %v3500_v41  ;;  %v3557_v40 = vcombine.high %v538_v30, %v542_v32  ;;  %v550_v41 = vld [vmem:[#allocation5 + $0x6a8] sm:$0xff]  ;;  %v311_v32 = vld [vmem:[%s4480_s23 + $0x30] sm:$0xff] }
  0xe6   : > { %1982 = vmatprep.subr.bf16.mxu0 %v3507_v42  ;;  %2104 = vmatprep.subr.bf16.mxu1 %v3509_v46  ;;  %v3554_v42 = vcombine.low %v537_v28, %v541_v29  ;;  %v557_v46 = vld [vmem:[#allocation5 + $0x6e0] sm:$0xff]  ;;  %v3565_v49 = vcombine.high %v546_v39, %v550_v41  ;;  %v3564_v52 = vcombine.low %v546_v39, %v550_v41  ;;  %v343_v28 = vld [vmem:[#allocation5 + $0x30] sm:$0xff]  ;;  %v340_v29 = vld [vmem:[#allocation5 + $0x18] sm:$0xff] }
  0xe7   : > { %1967 = vmatprep.mubr.bf16.mxu0 %v4517_v48  ;;  %2089 = vmatprep.mubr.bf16.mxu1 %v4517_v48  ;;  %v3570_v60 = vcombine.low %v553_v45, %v557_v46  ;;  %v352_v41 = vld [vmem:[#allocation5 + $0x78] sm:$0xff] }
  0xe9   : > { %1983 = vmatpush1.bf16.msra.mxu0 %v3506_v50  ;;  %2105 = vmatpush1.bf16.msra.mxu1 %v3508_v53  ;;  %v558_v50 = vld [vmem:[#allocation5 + $0x6e8] sm:$0xff]  ;;  %v3571_v53 = vcombine.high %v553_v45, %v557_v46 }
  0xea   : > { %1984 = vmatprep.subr.bf16.mxu0 %v3515_v54  ;;  %2106 = vmatprep.subr.bf16.mxu1 %v3517_v59  ;;  %v561_v54 = vld [vmem:[#allocation5 + $0x700] sm:$0xff]  ;;  %v3573_v57 = vcombine.high %v554_v47, %v558_v50  ;;  %v566_v59 = vld [vmem:[#allocation5 + $0x728] sm:$0xff] }
  0xeb   : > { %v3581_v3 = vcombine.high %v562_v56, %v566_v59  ;;  %v3578_v5 = vcombine.low %v561_v54, %v565_v55 }
  0xec   : > { %1968 = vmatmul.mubr.bf16.gmra.mrb[8].mxu0 %v4526_v61  ;;  %2090 = vmatmul.mubr.bf16.gmra.mrb[8].mxu1 %v4526_v61 }
  0xed   : > { %1985 = vmatpush1.bf16.msra.mxu0 %v3514_v62  ;;  %2107 = vmatpush1.bf16.msra.mxu1 %v3516_v63  ;;  %v3572_v62 = vcombine.low %v554_v47, %v558_v50  ;;  %v3579_v63 = vcombine.high %v561_v54, %v565_v55  ;;  %v355_v47 = vld [vmem:[#allocation5 + $0x90] sm:$0xff] }
  0xee   : > { %1986 = vmatprep.subr.bf16.mxu0 %v3523_v0  ;;  %2108 = vmatprep.subr.bf16.mxu1 %v3525_v4  ;;  %v569_v0 = vld [vmem:[#allocation5 + $0x740] sm:$0xff]  ;;  %v574_v4 = vld [vmem:[#allocation5 + $0x768] sm:$0xff] }
  0xef   : > { %2008 = vmatprep.mubr.bf16.mxu0 %v4528_v6  ;;  %2130 = vmatprep.mubr.bf16.mxu1 %v4528_v6  ;;  %v3589_v12 = vcombine.high %v570_v2, %v574_v4  ;;  %v3586_v14 = vcombine.low %v569_v0, %v573_v1 }
  0xf1   : > { %1987 = vmatpush1.bf16.msra.mxu0 %v3522_v7  ;;  %2109 = vmatpush1.bf16.msra.mxu1 %v3524_v8  ;;  %v3580_v7 = vcombine.low %v562_v56, %v566_v59  ;;  %v3587_v8 = vcombine.high %v569_v0, %v573_v1  ;;  %v315_v56 = vld [vmem:[%s4480_s23 + $0x50] sm:$0xff] }
  0xf2   : > { %1988 = vmatprep.subr.bf16.mxu0 %v3531_v9  ;;  %2110 = vmatprep.subr.bf16.mxu1 %v3533_v13  ;;  %v577_v9 = vld [vmem:[#allocation5 + $0x780] sm:$0xff]  ;;  %v582_v13 = vld [vmem:[#allocation5 + $0x7a8] sm:$0xff]  ;;  %v367_v1 = vld [vmem:[#allocation5 + $0xf0] sm:$0xff] }
  0xf3   : > { %v3597_v21 = vcombine.high %v578_v11, %v582_v13  ;;  %v3594_v23 = vcombine.low %v577_v9, %v581_v10 }
  0xf5   : > { %1989 = vmatpush1.bf16.msra.mxu0 %v3530_v16  ;;  %2111 = vmatpush1.bf16.msra.mxu1 %v3532_v17  ;;  %v3588_v16 = vcombine.low %v570_v2, %v574_v4  ;;  %v3595_v17 = vcombine.high %v577_v9, %v581_v10  ;;  %v368_v4 = vld [vmem:[#allocation5 + $0xf8] sm:$0xff] }
  0xf6   : > { %1990 = vmatprep.subr.bf16.mxu0 %v3539_v18  ;;  %2112 = vmatprep.subr.bf16.mxu1 %v3541_v22  ;;  %v585_v18 = vld [vmem:[#allocation5 + $0x7c0] sm:$0xff]  ;;  %v590_v22 = vld [vmem:[#allocation5 + $0x7e8] sm:$0xff] }
  0xf7   : > { %v3605_v30 = vcombine.high %v586_v20, %v590_v22  ;;  %v3604_v37 = vcombine.low %v586_v20, %v590_v22  ;;  %v379_v22 = vld [vmem:[#allocation5 + $0x150] sm:$0xff] }
  0xf9   : > { %1991 = vmatpush1.bf16.msra.mxu0 %v3538_v24  ;;  %2113 = vmatpush1.bf16.msra.mxu1 %v3540_v26  ;;  %v3596_v24 = vcombine.low %v578_v11, %v582_v13  ;;  %v3603_v26 = vcombine.high %v585_v18, %v589_v19  ;;  %v375_v13 = vld [vmem:[#allocation5 + $0x130] sm:$0xff] }
  0xfa   : > { %1992 = vmatprep.subr.bf16.mxu0 %v3547_v27  ;;  %2114 = vmatprep.subr.bf16.mxu1 %v3549_v31  ;;  %v339_v27 = vld [vmem:[#allocation5 + $0x10] sm:$0xff] }
  0xfb   : > { %v307_v31 = vld [vmem:[%s4480_s23 + $0x10] sm:$0xff]  ;;  %v3359_v39 = vcombine.high %v339_v27, %v343_v28  ;;  %v3358_v46 = vcombine.low %v339_v27, %v343_v28  ;;  %v384_v27 = vld [vmem:[#allocation5 + $0x178] sm:$0xff] }
  0xfc   : > { %v4538_v45 = vpack.c.bf16 %v311_v32, %v307_v31  ;;  %v387_v32 = vld [vmem:[#allocation5 + $0x190] sm:$0xff] }
  0xfd   : > { %1993 = vmatpush1.bf16.msra.mxu0 %v3546_v33  ;;  %2115 = vmatpush1.bf16.msra.mxu1 %v3548_v34  ;;  %v344_v33 = vld [vmem:[#allocation5 + $0x38] sm:$0xff]  ;;  %v3602_v34 = vcombine.low %v585_v18, %v589_v19  ;;  %v323_v18 = vld [vmem:[%s4480_s23 + $0x90] sm:$0xff] }
  0xfe   : > { %1994 = vmatprep.subr.bf16.mxu0 %v3555_v35  ;;  %2116 = vmatprep.subr.bf16.mxu1 %v3557_v40  ;;  %v347_v35 = vld [vmem:[#allocation5 + $0x50] sm:$0xff]  ;;  %v348_v40 = vld [vmem:[#allocation5 + $0x58] sm:$0xff]  ;;  %v3360_v50 = vcombine.low %v340_v29, %v344_v33 }
  0xff   : > { %v3369_v54 = vcombine.high %v348_v40, %v352_v41  ;;  %v3366_v59 = vcombine.low %v347_v35, %v351_v36 }
 0x101   : > { %1995 = vmatpush1.bf16.msra.mxu0 %v3554_v42  ;;  %2117 = vmatpush1.bf16.msra.mxu1 %v3556_v43  ;;  %v316_v42 = vld [vmem:[%s4480_s23 + $0x58] sm:$0xff]  ;;  %v3361_v43 = vcombine.high %v340_v29, %v344_v33  ;;  %v391_v33 = vld [vmem:[#allocation5 + $0x1b0] sm:$0xff] }
 0x102   : > { %1996 = vmatprep.subr.bf16.mxu0 %v3563_v44  ;;  %2118 = vmatprep.subr.bf16.mxu1 %v3565_v49  ;;  %v320_v44 = vld [vmem:[%s4480_s23 + $0x78] sm:$0xff]  ;;  %v359_v49 = vld [vmem:[#allocation5 + $0xb0] sm:$0xff] }
 0x103   : > { %v4540_v55 = vpack.c.bf16 %v320_v44, %v316_v42  ;;  %v399_v42 = vld [vmem:[#allocation5 + $0x1f0] sm:$0xff]  ;;  %v400_v44 = vld [vmem:[#allocation5 + $0x1f8] sm:$0xff] }
 0x105   : > { %1997 = vmatpush1.bf16.msra.mxu0 %v3562_v51  ;;  %2119 = vmatpush1.bf16.msra.mxu1 %v3564_v52  ;;  %v3367_v51 = vcombine.high %v347_v35, %v351_v36  ;;  %v356_v52 = vld [vmem:[#allocation5 + $0x98] sm:$0xff] }
 0x106   : > { %1998 = vmatprep.subr.bf16.mxu0 %v3571_v53  ;;  %2120 = vmatprep.subr.bf16.mxu1 %v3573_v57  ;;  %v360_v53 = vld [vmem:[#allocation5 + $0xb8] sm:$0xff]  ;;  %v319_v57 = vld [vmem:[%s4480_s23 + $0x70] sm:$0xff] }
 0x107   : > { %v3377_v0 = vcombine.high %v356_v52, %v360_v53  ;;  %v4548_v2 = vpack.c.bf16 %v319_v57, %v315_v56  ;;  %v392_v35 = vld [vmem:[#allocation5 + $0x1b8] sm:$0xff] }
 0x109   : > { %1999 = vmatpush1.bf16.msra.mxu0 %v3570_v60  ;;  %2121 = vmatpush1.bf16.msra.mxu1 %v3572_v62  ;;  %v363_v60 = vld [vmem:[#allocation5 + $0xd0] sm:$0xff]  ;;  %v3368_v62 = vcombine.low %v348_v40, %v352_v41 }
 0x10a   : > { %2000 = vmatprep.subr.bf16.mxu0 %v3579_v63  ;;  %2122 = vmatprep.subr.bf16.mxu1 %v3581_v3  ;;  %v3375_v63 = vcombine.high %v355_v47, %v359_v49  ;;  %v364_v3 = vld [vmem:[#allocation5 + $0xd8] sm:$0xff]  ;;  %v3383_v9 = vcombine.high %v363_v60, %v367_v1  ;;  %v395_v41 = vld [vmem:[#allocation5 + $0x1d0] sm:$0xff] }
 0x10b   : > { %v3385_v10 = vcombine.high %v364_v3, %v368_v4  ;;  %v3384_v19 = vcombine.low %v364_v3, %v368_v4  ;;  %v3414_v56 = vcombine.low %v395_v41, %v399_v42 }
 0x10d   : > { %2001 = vmatpush1.bf16.msra.mxu0 %v3578_v5  ;;  %2123 = vmatpush1.bf16.msra.mxu1 %v3580_v7  ;;  %v324_v5 = vld [vmem:[%s4480_s23 + $0x98] sm:$0xff]  ;;  %v3374_v7 = vcombine.low %v355_v47, %v359_v49  ;;  %v3415_v49 = vcombine.high %v395_v41, %v399_v42 }
 0x10e   : > { %2002 = vmatprep.subr.bf16.mxu0 %v3587_v8  ;;  %2124 = vmatprep.subr.bf16.mxu1 %v3589_v12  ;;  %v3376_v8 = vcombine.low %v356_v52, %v360_v53  ;;  %v4551_v11 = vpack.c.bf16 %v324_v5, %v324_v5  ;;  %v371_v12 = vld [vmem:[#allocation5 + $0x110] sm:$0xff]  ;;  %v404_v53 = vld [vmem:[#allocation5 + $0x218] sm:$0xff] }
 0x10f   : > { %v3391_v20 = vcombine.high %v371_v12, %v375_v13  ;;  %v3390_v28 = vcombine.low %v371_v12, %v375_v13  ;;  %v407_v52 = vld [vmem:[#allocation5 + $0x230] sm:$0xff] }
 0x111   : > { %2003 = vmatpush1.bf16.msra.mxu0 %v3586_v14  ;;  %2125 = vmatpush1.bf16.msra.mxu1 %v3588_v16  ;;  %v372_v14 = vld [vmem:[#allocation5 + $0x118] sm:$0xff] }
 0x112   : > { %2004 = vmatprep.subr.bf16.mxu0 %v3595_v17  ;;  %2126 = vmatprep.subr.bf16.mxu1 %v3597_v21  ;;  %v376_v16 = vld [vmem:[#allocation5 + $0x138] sm:$0xff]  ;;  %v3382_v17 = vcombine.low %v363_v60, %v367_v1  ;;  %v411_v60 = vld [vmem:[#allocation5 + $0x250] sm:$0xff] }
 0x113   : > { %v3393_v21 = vcombine.high %v372_v14, %v376_v16  ;;  %v3392_v29 = vcombine.low %v372_v14, %v376_v16 }
 0x115   : > { %2005 = vmatpush1.bf16.msra.mxu0 %v3594_v23  ;;  %2127 = vmatpush1.bf16.msra.mxu1 %v3596_v24  ;;  %v383_v23 = vld [vmem:[#allocation5 + $0x170] sm:$0xff]  ;;  %v4558_v24 = vpack.c.bf16 %v323_v18, %v323_v18 }
 0x116   : > { %2006 = vmatprep.subr.bf16.mxu0 %v3603_v26  ;;  %2128 = vmatprep.subr.bf16.mxu1 %v3605_v30  ;;  %v380_v26 = vld [vmem:[#allocation5 + $0x158] sm:$0xff]  ;;  %v3399_v30 = vcombine.high %v379_v22, %v383_v23  ;;  %v3398_v36 = vcombine.low %v379_v22, %v383_v23  ;;  %v431_v18 = vld [vmem:[#allocation5 + $0x2f0] sm:$0xff] }
 0x117   : > { %v3401_v31 = vcombine.high %v380_v26, %v384_v27 }
 0x119   : > { %2007 = vmatpush1.bf16.msra.mxu0 %v3602_v34  ;;  %2129 = vmatpush1.bf16.msra.mxu1 %v3604_v37  ;;  %v388_v34 = vld [vmem:[#allocation5 + $0x198] sm:$0xff]  ;;  %v3400_v37 = vcombine.low %v380_v26, %v384_v27  ;;  %v435_v27 = vld [vmem:[#allocation5 + $0x310] sm:$0xff] }
 0x11a   : > { %2159 = vmatprep.subr.bf16.mxu0 %v3359_v39  ;;  %2281 = vmatprep.subr.bf16.mxu1 %v3361_v43  ;;  %v3407_v39 = vcombine.high %v387_v32, %v391_v33  ;;  %v3409_v40 = vcombine.high %v388_v34, %v392_v35  ;;  %v396_v43 = vld [vmem:[#allocation5 + $0x1d8] sm:$0xff]  ;;  %v3408_v47 = vcombine.low %v388_v34, %v392_v35  ;;  %v443_v35 = vld [vmem:[#allocation5 + $0x350] sm:$0xff] }
 0x11b   : > { %v3416_v57 = vcombine.low %v396_v43, %v400_v44 }
 0x11c   : > { %2009 = vmatmul.mubr.bf16.vlgmr.msra.gmra.mrb[0].mxu0 %v4538_v45  ;;  %2131 = vmatmul.mubr.bf16.vlgmr.msra.gmra.mrb[0].mxu1 %v4538_v45 }
 0x11d   : > { %2160 = vmatpush1.bf16.msra.mxu0 %v3358_v46  ;;  %2282 = vmatpush1.bf16.msra.mxu1 %v3360_v50  ;;  %v3406_v46 = vcombine.low %v387_v32, %v391_v33  ;;  %v3417_v50 = vcombine.high %v396_v43, %v400_v44  ;;  %v451_v44 = vld [vmem:[#allocation5 + $0x390] sm:$0xff] }
 0x11e   : > { %2161 = vmatprep.subr.bf16.mxu0 %v3367_v51  ;;  %2283 = vmatprep.subr.bf16.mxu1 %v3369_v54  ;;  %v403_v51 = vld [vmem:[#allocation5 + $0x210] sm:$0xff]  ;;  %v408_v54 = vld [vmem:[#allocation5 + $0x238] sm:$0xff] }
 0x11f   : > { %2018 = vmatprep.mubr.bf16.mxu0 %v4540_v55  ;;  %2140 = vmatprep.mubr.bf16.mxu1 %v4540_v55  ;;  %v3422_v1 = vcombine.low %v403_v51, %v407_v52  ;;  %v3424_v3 = vcombine.low %v404_v53, %v408_v54 }
 0x121   : > { %2162 = vmatpush1.bf16.msra.mxu0 %v3366_v59  ;;  %2284 = vmatpush1.bf16.msra.mxu1 %v3368_v62  ;;  %v3423_v59 = vcombine.high %v403_v51, %v407_v52  ;;  %v415_v62 = vld [vmem:[#allocation5 + $0x270] sm:$0xff] }
 0x122   : > { %2163 = vmatprep.subr.bf16.mxu0 %v3375_v63  ;;  %2285 = vmatprep.subr.bf16.mxu1 %v3377_v0  ;;  %v412_v63 = vld [vmem:[#allocation5 + $0x258] sm:$0xff]  ;;  %v3431_v4 = vcombine.high %v411_v60, %v415_v62  ;;  %v3430_v12 = vcombine.low %v411_v60, %v415_v62 }
 0x123   : > { %v416_v0 = vld [vmem:[#allocation5 + $0x278] sm:$0xff] }
 0x124   : > { %2019 = vmatmul.mubr.bf16.gmra.mrb[4].mxu0 %v4548_v2  ;;  %2141 = vmatmul.mubr.bf16.gmra.mrb[4].mxu1 %v4548_v2  ;;  %v3433_v5 = vcombine.high %v412_v63, %v416_v0  ;;  %v3432_v13 = vcombine.low %v412_v63, %v416_v0  ;;  %v467_v0 = vld [vmem:[#allocation5 + $0x410] sm:$0xff] }
 0x125   : > { %2164 = vmatpush1.bf16.msra.mxu0 %v3374_v7  ;;  %2286 = vmatpush1.bf16.msra.mxu1 %v3376_v8  ;;  %v419_v7 = vld [vmem:[#allocation5 + $0x290] sm:$0xff] }
 0x126   : > { %2165 = vmatprep.subr.bf16.mxu0 %v3383_v9  ;;  %2287 = vmatprep.subr.bf16.mxu1 %v3385_v10  ;;  %v423_v8 = vld [vmem:[#allocation5 + $0x2b0] sm:$0xff]  ;;  %v420_v9 = vld [vmem:[#allocation5 + $0x298] sm:$0xff] }
 0x127   : > { %2028 = vmatprep.mubr.bf16.mxu0 %v4551_v11  ;;  %2150 = vmatprep.mubr.bf16.mxu1 %v4551_v11  ;;  %v424_v10 = vld [vmem:[#allocation5 + $0x2b8] sm:$0xff]  ;;  %v3439_v14 = vcombine.high %v419_v7, %v423_v8 }
 0x128   : > { %v3441_v16 = vcombine.high %v420_v9, %v424_v10  ;;  %v3440_v22 = vcombine.low %v420_v9, %v424_v10  ;;  %v475_v10 = vld [vmem:[#allocation5 + $0x450] sm:$0xff] }
 0x129   : > { %2166 = vmatpush1.bf16.msra.mxu0 %v3382_v17  ;;  %2288 = vmatpush1.bf16.msra.mxu1 %v3384_v19  ;;  %v427_v17 = vld [vmem:[#allocation5 + $0x2d0] sm:$0xff]  ;;  %v428_v19 = vld [vmem:[#allocation5 + $0x2d8] sm:$0xff] }
 0x12a   : > { %2167 = vmatprep.subr.bf16.mxu0 %v3391_v20  ;;  %2289 = vmatprep.subr.bf16.mxu1 %v3393_v21  ;;  %v432_v20 = vld [vmem:[#allocation5 + $0x2f8] sm:$0xff]  ;;  %v3438_v21 = vcombine.low %v419_v7, %v423_v8  ;;  %v3447_v23 = vcombine.high %v427_v17, %v431_v18 }
 0x12b   : > { %v3449_v26 = vcombine.high %v428_v19, %v432_v20  ;;  %v3448_v32 = vcombine.low %v428_v19, %v432_v20  ;;  %v483_v20 = vld [vmem:[#allocation5 + $0x490] sm:$0xff] }
 0x12c   : > { %2029 = vmatmul.mubr.bf16.gmra.mrb[8].mxu0 %v4558_v24  ;;  %2151 = vmatmul.mubr.bf16.gmra.mrb[8].mxu1 %v4558_v24 }
 0x12d   : > { %2168 = vmatpush1.bf16.msra.mxu0 %v3390_v28  ;;  %2290 = vmatpush1.bf16.msra.mxu1 %v3392_v29  ;;  %v439_v28 = vld [vmem:[#allocation5 + $0x330] sm:$0xff]  ;;  %v436_v29 = vld [vmem:[#allocation5 + $0x318] sm:$0xff] }
 0x12e   : > { %2169 = vmatprep.subr.bf16.mxu0 %v3399_v30  ;;  %2291 = vmatprep.subr.bf16.mxu1 %v3401_v31  ;;  %v440_v30 = vld [vmem:[#allocation5 + $0x338] sm:$0xff]  ;;  %v3446_v31 = vcombine.low %v427_v17, %v431_v18  ;;  %v3455_v33 = vcombine.high %v435_v27, %v439_v28 }
 0x12f   : > { %2191 = vmatprep.mubr.bf16.mxu0 %v4496_v58  ;;  %2313 = vmatprep.mubr.bf16.mxu1 %v4496_v58  ;;  %v3425_v58 = vcombine.high %v404_v53, %v408_v54  ;;  %v3457_v34 = vcombine.high %v436_v29, %v440_v30  ;;  %v3456_v41 = vcombine.low %v436_v29, %v440_v30  ;;  %v459_v54 = vld [vmem:[#allocation5 + $0x3d0] sm:$0xff] }
 0x130   : > { %v491_v30 = vld [vmem:[#allocation5 + $0x4d0] sm:$0xff] }
 0x131   : > { %2170 = vmatpush1.bf16.msra.mxu0 %v3398_v36  ;;  %2292 = vmatpush1.bf16.msra.mxu1 %v3400_v37  ;;  %v447_v36 = vld [vmem:[#allocation5 + $0x370] sm:$0xff]  ;;  %v444_v37 = vld [vmem:[#allocation5 + $0x358] sm:$0xff] }
 0x132   : > { %2171 = vmatprep.subr.bf16.mxu0 %v3407_v39  ;;  %2293 = vmatprep.subr.bf16.mxu1 %v3409_v40  ;;  %v448_v39 = vld [vmem:[#allocation5 + $0x378] sm:$0xff]  ;;  %v3454_v40 = vcombine.low %v435_v27, %v439_v28  ;;  %v3463_v42 = vcombine.high %v443_v35, %v447_v36 }
 0x133   : > { %v3465_v43 = vcombine.high %v444_v37, %v448_v39  ;;  %v3464_v51 = vcombine.low %v444_v37, %v448_v39  ;;  %v499_v37 = vld [vmem:[#allocation5 + $0x510] sm:$0xff] }
 0x134   : > { %v503_v39 = vld [vmem:[#allocation5 + $0x530] sm:$0xff] }
 0x135   : > { %2172 = vmatpush1.bf16.msra.mxu0 %v3406_v46  ;;  %2294 = vmatpush1.bf16.msra.mxu1 %v3408_v47  ;;  %v455_v46 = vld [vmem:[#allocation5 + $0x3b0] sm:$0xff]  ;;  %v452_v47 = vld [vmem:[#allocation5 + $0x398] sm:$0xff] }
 0x136   : > { %2173 = vmatprep.subr.bf16.mxu0 %v3415_v49  ;;  %2295 = vmatprep.subr.bf16.mxu1 %v3417_v50  ;;  %v456_v49 = vld [vmem:[#allocation5 + $0x3b8] sm:$0xff]  ;;  %v3462_v50 = vcombine.low %v443_v35, %v447_v36  ;;  %v3471_v52 = vcombine.high %v451_v44, %v455_v46 }
 0x137   : > { %v3473_v53 = vcombine.high %v452_v47, %v456_v49  ;;  %v3472_v60 = vcombine.low %v452_v47, %v456_v49  ;;  %v511_v47 = vld [vmem:[#allocation5 + $0x570] sm:$0xff]  ;;  %v508_v49 = vld [vmem:[#allocation5 + $0x558] sm:$0xff] }
 0x139   : > { %2174 = vmatpush1.bf16.msra.mxu0 %v3414_v56  ;;  %2296 = vmatpush1.bf16.msra.mxu1 %v3416_v57  ;;  %v463_v56 = vld [vmem:[#allocation5 + $0x3f0] sm:$0xff]  ;;  %v460_v57 = vld [vmem:[#allocation5 + $0x3d8] sm:$0xff] }
 0x13a   : > { %2175 = vmatprep.subr.bf16.mxu0 %v3423_v59  ;;  %2297 = vmatprep.subr.bf16.mxu1 %v3425_v58  ;;  %v464_v59 = vld [vmem:[#allocation5 + $0x3f8] sm:$0xff]  ;;  %v3470_v58 = vcombine.low %v451_v44, %v455_v46  ;;  %v3479_v62 = vcombine.high %v459_v54, %v463_v56  ;;  %v507_v46 = vld [vmem:[#allocation5 + $0x550] sm:$0xff] }
 0x13b   : > { %v3481_v63 = vcombine.high %v460_v57, %v464_v59  ;;  %v3480_v7 = vcombine.low %v460_v57, %v464_v59  ;;  %v516_v57 = vld [vmem:[#allocation5 + $0x598] sm:$0xff] }
 0x13c   : > { %v520_v59 = vld [vmem:[#allocation5 + $0x5b8] sm:$0xff] }
 0x13d   : > { %2176 = vmatpush1.bf16.msra.mxu0 %v3422_v1  ;;  %2298 = vmatpush1.bf16.msra.mxu1 %v3424_v3  ;;  %v471_v1 = vld [vmem:[#allocation5 + $0x430] sm:$0xff]  ;;  %v468_v3 = vld [vmem:[#allocation5 + $0x418] sm:$0xff] }
 0x13e   : > { %2177 = vmatprep.subr.bf16.mxu0 %v3431_v4  ;;  %2299 = vmatprep.subr.bf16.mxu1 %v3433_v5  ;;  %v472_v4 = vld [vmem:[#allocation5 + $0x438] sm:$0xff]  ;;  %v3478_v5 = vcombine.low %v459_v54, %v463_v56  ;;  %v3487_v8 = vcombine.high %v467_v0, %v471_v1  ;;  %v515_v54 = vld [vmem:[#allocation5 + $0x590] sm:$0xff] }
 0x13f   : > { %v3489_v9 = vcombine.high %v468_v3, %v472_v4  ;;  %v3488_v17 = vcombine.low %v468_v3, %v472_v4  ;;  %v519_v56 = vld [vmem:[#allocation5 + $0x5b0] sm:$0xff]  ;;  %v528_v3 = vld [vmem:[#allocation5 + $0x5f8] sm:$0xff] }
 0x140   : > { %v3534_v4 = vcombine.low %v515_v54, %v519_v56 }
 0x141   : > { %2178 = vmatpush1.bf16.msra.mxu0 %v3430_v12  ;;  %2300 = vmatpush1.bf16.msra.mxu1 %v3432_v13  ;;  %v479_v12 = vld [vmem:[#allocation5 + $0x470] sm:$0xff]  ;;  %v476_v13 = vld [vmem:[#allocation5 + $0x458] sm:$0xff] }
 0x142   : > { %2179 = vmatprep.subr.bf16.mxu0 %v3439_v14  ;;  %2301 = vmatprep.subr.bf16.mxu1 %v3441_v16  ;;  %v480_v14 = vld [vmem:[#allocation5 + $0x478] sm:$0xff]  ;;  %v3486_v16 = vcombine.low %v467_v0, %v471_v1  ;;  %v3495_v18 = vcombine.high %v475_v10, %v479_v12  ;;  %v527_v0 = vld [vmem:[#allocation5 + $0x5f0] sm:$0xff] }
 0x143   : > { %v3497_v19 = vcombine.high %v476_v13, %v480_v14  ;;  %v3496_v27 = vcombine.low %v476_v13, %v480_v14  ;;  %v524_v1 = vld [vmem:[#allocation5 + $0x5d8] sm:$0xff] }
 0x144   : > { %v3544_v14 = vcombine.low %v524_v1, %v528_v3 }
 0x145   : > { %2180 = vmatpush1.bf16.msra.mxu0 %v3438_v21  ;;  %2302 = vmatpush1.bf16.msra.mxu1 %v3440_v22  ;;  %v487_v21 = vld [vmem:[#allocation5 + $0x4b0] sm:$0xff]  ;;  %v484_v22 = vld [vmem:[#allocation5 + $0x498] sm:$0xff] }
 0x146   : > { %2181 = vmatprep.subr.bf16.mxu0 %v3447_v23  ;;  %2303 = vmatprep.subr.bf16.mxu1 %v3449_v26  ;;  %v488_v23 = vld [vmem:[#allocation5 + $0x4b8] sm:$0xff]  ;;  %v3494_v26 = vcombine.low %v475_v10, %v479_v12  ;;  %v3503_v28 = vcombine.high %v483_v20, %v487_v21 }
 0x147   : > { %v3505_v29 = vcombine.high %v484_v22, %v488_v23  ;;  %v532_v10 = vld [vmem:[#allocation5 + $0x618] sm:$0xff] }
 0x148   : > { %v536_v12 = vld [vmem:[#allocation5 + $0x638] sm:$0xff] }
 0x149   : > { %2182 = vmatpush1.bf16.msra.mxu0 %v3446_v31  ;;  %2304 = vmatpush1.bf16.msra.mxu1 %v3448_v32  ;;  %v495_v31 = vld [vmem:[#allocation5 + $0x4f0] sm:$0xff]  ;;  %v492_v32 = vld [vmem:[#allocation5 + $0x4d8] sm:$0xff] }
 0x14a   : > { %2183 = vmatprep.subr.bf16.mxu0 %v3455_v33  ;;  %2305 = vmatprep.subr.bf16.mxu1 %v3457_v34  ;;  %v496_v33 = vld [vmem:[#allocation5 + $0x4f8] sm:$0xff]  ;;  %v3502_v34 = vcombine.low %v483_v20, %v487_v21  ;;  %v3511_v35 = vcombine.high %v491_v30, %v495_v31 }
 0x14b   : > { %v3513_v36 = vcombine.high %v492_v32, %v496_v33  ;;  %v544_v20 = vld [vmem:[#allocation5 + $0x678] sm:$0xff] }
 0x14d   : > { %2184 = vmatpush1.bf16.msra.mxu0 %v3454_v40  ;;  %2306 = vmatpush1.bf16.msra.mxu1 %v3456_v41  ;;  %v500_v40 = vld [vmem:[#allocation5 + $0x518] sm:$0xff] }
 0x14e   : > { %2185 = vmatprep.subr.bf16.mxu0 %v3463_v42  ;;  %2307 = vmatprep.subr.bf16.mxu1 %v3465_v43  ;;  %v504_v41 = vld [vmem:[#allocation5 + $0x538] sm:$0xff]  ;;  %v3510_v42 = vcombine.low %v491_v30, %v495_v31  ;;  %v3519_v43 = vcombine.high %v499_v37, %v503_v39 }
 0x14f   : > { %v3521_v44 = vcombine.high %v500_v40, %v504_v41  ;;  %v552_v30 = vld [vmem:[#allocation5 + $0x6b8] sm:$0xff] }
 0x151   : > { %2186 = vmatpush1.bf16.msra.mxu0 %v3462_v50  ;;  %2308 = vmatpush1.bf16.msra.mxu1 %v3464_v51  ;;  %v512_v50 = vld [vmem:[#allocation5 + $0x578] sm:$0xff]  ;;  %v3518_v51 = vcombine.low %v499_v37, %v503_v39 }
 0x152   : > { %2187 = vmatprep.subr.bf16.mxu0 %v3471_v52  ;;  %2309 = vmatprep.subr.bf16.mxu1 %v3473_v53  ;;  %v3520_v52 = vcombine.low %v500_v40, %v504_v41  ;;  %v3529_v53 = vcombine.high %v508_v49, %v512_v50  ;;  %v560_v37 = vld [vmem:[#allocation5 + $0x6f8] sm:$0xff] }
 0x155   : > { %2188 = vmatpush1.bf16.msra.mxu0 %v3470_v58  ;;  %2310 = vmatpush1.bf16.msra.mxu1 %v3472_v60  ;;  %v3526_v58 = vcombine.low %v507_v46, %v511_v47  ;;  %v3535_v60 = vcombine.high %v515_v54, %v519_v56  ;;  %v576_v54 = vld [vmem:[#allocation5 + $0x778] sm:$0xff] }
 0x156   : > { %2189 = vmatprep.subr.bf16.mxu0 %v3479_v62  ;;  %2311 = vmatprep.subr.bf16.mxu1 %v3481_v63  ;;  %v3537_v62 = vcombine.high %v516_v57, %v520_v59  ;;  %v523_v63 = vld [vmem:[#allocation5 + $0x5d0] sm:$0xff] }
 0x157   : > { %v3542_v13 = vcombine.low %v523_v63, %v527_v0 }
 0x159   : > { %2190 = vmatpush1.bf16.msra.mxu0 %v3478_v5  ;;  %2312 = vmatpush1.bf16.msra.mxu1 %v3480_v7  ;;  %v3536_v5 = vcombine.low %v516_v57, %v520_v59  ;;  %v3545_v7 = vcombine.high %v524_v1, %v528_v3 }
 0x15a   : > { %2220 = vmatprep.subr.bf16.mxu0 %v3487_v8  ;;  %2342 = vmatprep.subr.bf16.mxu1 %v3489_v9  ;;  %v531_v8 = vld [vmem:[#allocation5 + $0x610] sm:$0xff] }
 0x15b   : > { %v535_v9 = vld [vmem:[#allocation5 + $0x630] sm:$0xff] }
 0x15c   : > { %2192 = vmatmul.mubr.bf16.vlgmr.msra.gmra.mrb[12].mxu0 %v4502_v15  ;;  %2314 = vmatmul.mubr.bf16.vlgmr.msra.gmra.mrb[12].mxu1 %v4502_v15  ;;  %v3504_v15 = vcombine.low %v484_v22, %v488_v23  ;;  %v3550_v21 = vcombine.low %v531_v8, %v535_v9  ;;  %v3552_v22 = vcombine.low %v532_v10, %v536_v12 }
 0x15d   : > { %2221 = vmatpush1.bf16.msra.mxu0 %v3486_v16  ;;  %2343 = vmatpush1.bf16.msra.mxu1 %v3488_v17  ;;  %v3551_v16 = vcombine.high %v531_v8, %v535_v9  ;;  %v539_v17 = vld [vmem:[#allocation5 + $0x650] sm:$0xff]  ;;  %v592_v8 = vld [vmem:[#allocation5 + $0x7f8] sm:$0xff] }
 0x15e   : > { %2222 = vmatprep.subr.bf16.mxu0 %v3495_v18  ;;  %2344 = vmatprep.subr.bf16.mxu1 %v3497_v19  ;;  %v543_v18 = vld [vmem:[#allocation5 + $0x670] sm:$0xff]  ;;  %v540_v19 = vld [vmem:[#allocation5 + $0x658] sm:$0xff] }
 0x15f   : > { %2201 = vmatprep.mubr.bf16.mxu0 %v4506_v25  ;;  %2323 = vmatprep.mubr.bf16.mxu1 %v4506_v25  ;;  %v3512_v25 = vcombine.low %v492_v32, %v496_v33  ;;  %v3559_v23 = vcombine.high %v539_v17, %v543_v18  ;;  %v3558_v31 = vcombine.low %v539_v17, %v543_v18  ;;  %v3993_v17 = vld [vmem:[#allocation8 + $0xc0] sm:$0xff]  }
 0x160   : > { %v3560_v32 = vcombine.low %v540_v19, %v544_v20  ;;  %v3994_v18 = vld [vmem:[#allocation8] sm:$0xff]  }
 0x161   : > { %2223 = vmatpush1.bf16.msra.mxu0 %v3494_v26  ;;  %2345 = vmatpush1.bf16.msra.mxu1 %v3496_v27  ;;  %v3561_v26 = vcombine.high %v540_v19, %v544_v20  ;;  %v547_v27 = vld [vmem:[#allocation5 + $0x690] sm:$0xff]  ;;  %v3995_v19 = vld [vmem:[#allocation8 + $0x80] sm:$0xff]  }
 0x162   : > { %2224 = vmatprep.subr.bf16.mxu0 %v3503_v28  ;;  %2346 = vmatprep.subr.bf16.mxu1 %v3505_v29  ;;  %v551_v28 = vld [vmem:[#allocation5 + $0x6b0] sm:$0xff]  ;;  %v548_v29 = vld [vmem:[#allocation5 + $0x698] sm:$0xff] }
 0x163   : > { %v3567_v33 = vcombine.high %v547_v27, %v551_v28  ;;  %v3566_v39 = vcombine.low %v547_v27, %v551_v28  ;;  %v3568_v40 = vcombine.low %v548_v29, %v552_v30  ;;  %v3996_v20 = vld [vmem:[#allocation8 + $0x48] sm:$0xff]   ;;  %v4001_v27 = vld [vmem:[#allocation8 + $0xd0] sm:$0xff]  }
 0x164   : > { %2202 = vmatmul.mubr.bf16.gmra.mrb[16].mxu0 %v4514_v38  ;;  %2324 = vmatmul.mubr.bf16.gmra.mrb[16].mxu1 %v4514_v38  ;;  %v3527_v38 = vcombine.high %v507_v46, %v511_v47  ;;  %v568_v46 = vld [vmem:[#allocation5 + $0x738] sm:$0xff] }
 0x165   : > { %2225 = vmatpush1.bf16.msra.mxu0 %v3502_v34  ;;  %2347 = vmatpush1.bf16.msra.mxu1 %v3504_v15  ;;  %v3569_v34 = vcombine.high %v548_v29, %v552_v30  ;;  %v555_v15 = vld [vmem:[#allocation5 + $0x6d0] sm:$0xff]  ;;  %v4002_v28 = vld [vmem:[#allocation8 + $0x10] sm:$0xff]   ;;  %v4004_v30 = vld [vmem:[#allocation8 + $0x58] sm:$0xff]  }
 0x166   : > { %2226 = vmatprep.subr.bf16.mxu0 %v3511_v35  ;;  %2348 = vmatprep.subr.bf16.mxu1 %v3513_v36  ;;  %v559_v35 = vld [vmem:[#allocation5 + $0x6f0] sm:$0xff]  ;;  %v556_v36 = vld [vmem:[#allocation5 + $0x6d8] sm:$0xff] }
 0x167   : > { %2211 = vmatprep.mubr.bf16.mxu0 %v4517_v48  ;;  %2333 = vmatprep.mubr.bf16.mxu1 %v4517_v48  ;;  %v3528_v48 = vcombine.low %v508_v49, %v512_v50  ;;  %v3575_v41 = vcombine.high %v555_v15, %v559_v35  ;;  %v3574_v47 = vcombine.low %v555_v15, %v559_v35  ;;  %v4003_v29 = vld [vmem:[#allocation8 + $0x90] sm:$0xff]   ;;  %v4011_v15 = vld [vmem:[#allocation8 + $0xa0] sm:$0xff]   ;;  %v4012_v35 = vld [vmem:[#allocation8 + $0x68] sm:$0xff]  }
 0x168   : > { %v3576_v49 = vcombine.low %v556_v36, %v560_v37 }
 0x169   : > { %2227 = vmatpush1.bf16.msra.mxu0 %v3510_v42  ;;  %2349 = vmatpush1.bf16.msra.mxu1 %v3512_v25  ;;  %v3577_v42 = vcombine.high %v556_v36, %v560_v37  ;;  %v563_v25 = vld [vmem:[#allocation5 + $0x710] sm:$0xff]  ;;  %v4016_v37 = vld [vmem:[#allocation8 + $0x70] sm:$0xff]  }
 0x16a   : > { %2228 = vmatprep.subr.bf16.mxu0 %v3519_v43  ;;  %2350 = vmatprep.subr.bf16.mxu1 %v3521_v44  ;;  %v567_v43 = vld [vmem:[#allocation5 + $0x730] sm:$0xff]  ;;  %v564_v44 = vld [vmem:[#allocation5 + $0x718] sm:$0xff] }
 0x16b   : > { %v3583_v50 = vcombine.high %v563_v25, %v567_v43  ;;  %v3582_v56 = vcombine.low %v563_v25, %v567_v43  ;;  %v3584_v57 = vcombine.low %v564_v44, %v568_v46  ;;  %v4015_v36 = vld [vmem:[#allocation8 + $0xa8] sm:$0xff]   ;;  %v4021_v25 = vld [vmem:[#allocation8 + $0xf8] sm:$0xff]  }
 0x16c   : > { %2212 = vmatmul.mubr.bf16.gmra.mrb[20].mxu0 %v4526_v61  ;;  %2334 = vmatmul.mubr.bf16.gmra.mrb[20].mxu1 %v4526_v61  ;;  %v3543_v61 = vcombine.high %v523_v63, %v527_v0  ;;  %v584_v63 = vld [vmem:[#allocation5 + $0x7b8] sm:$0xff]  ;;  %v4022_v43 = vld [vmem:[#allocation8 + $0x38] sm:$0xff]  }
 0x16d   : > { %2229 = vmatpush1.bf16.msra.mxu0 %v3518_v51  ;;  %2351 = vmatpush1.bf16.msra.mxu1 %v3520_v52  ;;  %v3585_v51 = vcombine.high %v564_v44, %v568_v46  ;;  %v571_v52 = vld [vmem:[#allocation5 + $0x750] sm:$0xff]  ;;  %v4024_v44 = vld [vmem:[#allocation8 + $0x140] sm:$0xff]  }
 0x16e   : > { %2230 = vmatprep.subr.bf16.mxu0 %v3527_v38  ;;  %2352 = vmatprep.subr.bf16.mxu1 %v3529_v53  ;;  %v575_v38 = vld [vmem:[#allocation5 + $0x770] sm:$0xff]  ;;  %v572_v53 = vld [vmem:[#allocation5 + $0x758] sm:$0xff]  ;;  %v4025_v46 = vld [vmem:[#allocation8 + $0x1c0] sm:$0xff]  }
 0x16f   : > { %2252 = vmatprep.mubr.bf16.mxu0 %v4528_v6  ;;  %2374 = vmatprep.mubr.bf16.mxu1 %v4528_v6  ;;  %v3553_v6 = vcombine.high %v532_v10, %v536_v12  ;;  %v3591_v59 = vcombine.high %v571_v52, %v575_v38  ;;  %v3590_v0 = vcombine.low %v571_v52, %v575_v38 }
 0x170   : > { %v3592_v1 = vcombine.low %v572_v53, %v576_v54 }
 0x171   : > { %2231 = vmatpush1.bf16.msra.mxu0 %v3526_v58  ;;  %2353 = vmatpush1.bf16.msra.mxu1 %v3528_v48  ;;  %v3593_v58 = vcombine.high %v572_v53, %v576_v54  ;;  %v579_v48 = vld [vmem:[#allocation5 + $0x790] sm:$0xff] }
 0x172   : > { %2232 = vmatprep.subr.bf16.mxu0 %v3535_v60  ;;  %2354 = vmatprep.subr.bf16.mxu1 %v3537_v62  ;;  %v583_v60 = vld [vmem:[#allocation5 + $0x7b0] sm:$0xff]  ;;  %v580_v62 = vld [vmem:[#allocation5 + $0x798] sm:$0xff] }
 0x173   : > { %v3599_v3 = vcombine.high %v579_v48, %v583_v60  ;;  %v3598_v9 = vcombine.low %v579_v48, %v583_v60  ;;  %v3600_v10 = vcombine.low %v580_v62, %v584_v63 }
 0x175   : > { %2233 = vmatpush1.bf16.msra.mxu0 %v3534_v4  ;;  %2355 = vmatpush1.bf16.msra.mxu1 %v3536_v5  ;;  %v3601_v4 = vcombine.high %v580_v62, %v584_v63  ;;  %v587_v5 = vld [vmem:[#allocation5 + $0x7d0] sm:$0xff] }
 0x176   : > { %2234 = vmatprep.subr.bf16.mxu0 %v3543_v61  ;;  %2356 = vmatprep.subr.bf16.mxu1 %v3545_v7  ;;  %v591_v61 = vld [vmem:[#allocation5 + $0x7f0] sm:$0xff]  ;;  %v588_v7 = vld [vmem:[#allocation5 + $0x7d8] sm:$0xff] }
 0x177   : > { %v3607_v12 = vcombine.high %v587_v5, %v591_v61 }
 0x179   : > { %2235 = vmatpush1.bf16.msra.mxu0 %v3542_v13  ;;  %2357 = vmatpush1.bf16.msra.mxu1 %v3544_v14  ;;  %v3609_v13 = vcombine.high %v588_v7, %v592_v8  ;;  %v3606_v14 = vcombine.low %v587_v5, %v591_v61 }
 0x17a   : > { %2236 = vmatprep.subr.bf16.mxu0 %v3551_v16  ;;  %2358 = vmatprep.subr.bf16.mxu1 %v3553_v6  ;;  %v3608_v16 = vcombine.low %v588_v7, %v592_v8  ;;  %v3992_v6 = vld [vmem:[#allocation8 + $0x40] sm:$0xff]  }
 0x17d   : > { %2237 = vmatpush1.bf16.msra.mxu0 %v3550_v21  ;;  %2359 = vmatpush1.bf16.msra.mxu1 %v3552_v22  ;;  %v3997_v21 = vld [vmem:[#allocation8 + $0xc8] sm:$0xff]  }
 0x17e   : > { %2238 = vmatprep.subr.bf16.mxu0 %v3559_v23  ;;  %2360 = vmatprep.subr.bf16.mxu1 %v3561_v26  ;;  %v3998_v22 = vld [vmem:[#allocation8 + $0x8] sm:$0xff]   ;;  %v4000_v26 = vld [vmem:[#allocation8 + $0x50] sm:$0xff]  }
 0x17f   : > { %v3999_v23 = vld [vmem:[#allocation8 + $0x88] sm:$0xff]  }
 0x181   : > { %2239 = vmatpush1.bf16.msra.mxu0 %v3558_v31  ;;  %2361 = vmatpush1.bf16.msra.mxu1 %v3560_v32  ;;  %v4007_v31 = vld [vmem:[#allocation8 + $0x98] sm:$0xff]   ;;  %v4008_v32 = vld [vmem:[#allocation8 + $0x60] sm:$0xff]  }
 0x182   : > { %2240 = vmatprep.subr.bf16.mxu0 %v3567_v33  ;;  %2362 = vmatprep.subr.bf16.mxu1 %v3569_v34  ;;  %v4009_v33 = vld [vmem:[#allocation8 + $0xe0] sm:$0xff]  }
 0x183   : > { %v4010_v34 = vld [vmem:[#allocation8 + $0x20] sm:$0xff]  }
 0x185   : > { %2241 = vmatpush1.bf16.msra.mxu0 %v3566_v39  ;;  %2363 = vmatpush1.bf16.msra.mxu1 %v3568_v40  ;;  %v4017_v39 = vld [vmem:[#allocation8 + $0xf0] sm:$0xff]  }
 0x186   : > { %2242 = vmatprep.subr.bf16.mxu0 %v3575_v41  ;;  %2364 = vmatprep.subr.bf16.mxu1 %v3577_v42  ;;  %v4018_v40 = vld [vmem:[#allocation8 + $0x30] sm:$0xff]   ;;  %v4020_v42 = vld [vmem:[#allocation8 + $0x78] sm:$0xff]  }
 0x187   : > { %v4019_v41 = vld [vmem:[#allocation8 + $0xb0] sm:$0xff]  }
 0x189   : > { %2243 = vmatpush1.bf16.msra.mxu0 %v3574_v47  ;;  %2365 = vmatpush1.bf16.msra.mxu1 %v3576_v49  ;;  %v595_v47 = vlaneseq }
 0x18a   : > { %2244 = vmatprep.subr.bf16.mxu0 %v3583_v50  ;;  %2366 = vmatprep.subr.bf16.mxu1 %v3585_v51  ;;  %v4589_v51 = vld [vmem:[#allocation7] sm:$0xff] }
 0x18b   : > { %v4586_v49 = vshrl.u32 %v595_v47, 7 }
 0x18d   : > { %2245 = vmatpush1.bf16.msra.mxu0 %v3582_v56  ;;  %2367 = vmatpush1.bf16.msra.mxu1 %v3584_v57  ;;  %v597_v50 = vsub.s32 0, %v4586_v49  ;;  %v605_v52 = vsub.s32 2, %v4586_v49  ;;  %v601_v38 = vsub.s32 1, %v4586_v49  ;;  %v609_v53 = vsub.s32 3, %v4586_v49 }
 0x18e   : > { %2246 = vmatprep.subr.bf16.mxu0 %v3591_v59  ;;  %2368 = vmatprep.subr.bf16.mxu1 %v3593_v58 }
 0x18f   : > { %v4595_v54 = vrot.slane %v4589_v51, %v597_v50  ;;  %v4598_v56 = vrot.slane %v4589_v51, %v605_v52  ;;  %v4601_v57 = vrot.slane %v4589_v51, %v601_v38  ;;  %v4604_v59 = vrot.slane %v4589_v51, %v609_v53  ;;  %v4033_v53 = vld [vmem:[#allocation8 + $0x1d0] sm:$0xff]  }
 0x191   : > { %2247 = vmatpush1.bf16.msra.mxu0 %v3590_v0  ;;  %2369 = vmatpush1.bf16.msra.mxu1 %v3592_v1 }
 0x192   : > { %2248 = vmatprep.subr.bf16.mxu0 %v3599_v3  ;;  %2370 = vmatprep.subr.bf16.mxu1 %v3601_v4 }
 0x195   : > { %2249 = vmatpush1.bf16.msra.mxu0 %v3598_v9  ;;  %2371 = vmatpush1.bf16.msra.mxu1 %v3600_v10 }
 0x196   : > { %2250 = vmatprep.subr.bf16.mxu0 %v3607_v12  ;;  %2372 = vmatprep.subr.bf16.mxu1 %v3609_v13 }
 0x199   : > { %2251 = vmatpush1.bf16.msra.mxu0 %v3606_v14  ;;  %2373 = vmatpush1.bf16.msra.mxu1 %v3608_v16 }
 0x19a   : > { %3687 = vmatprep.subr.bf16.mxu0 %v3992_v6  ;;  %3721 = vmatprep.subr.bf16.mxu1 %v3993_v17 }
 0x19c   : > { %2253 = vmatmul.mubr.bf16.vlgmr.msra.gmra.mrb[12].mxu0 %v4538_v45  ;;  %2375 = vmatmul.mubr.bf16.vlgmr.msra.gmra.mrb[12].mxu1 %v4538_v45  ;;  %v4005_v45 = vld [vmem:[#allocation8 + $0xd8] sm:$0xff]  }
 0x19d   : > { %2262 = vmatprep.mubr.bf16.mxu0 %v4540_v55  ;;  %2384 = vmatprep.mubr.bf16.mxu1 %v4540_v55  ;;  %v4006_v55 = vld [vmem:[#allocation8 + $0x18] sm:$0xff]  }
 0x19e   : > { %3688 = vmatpush3.bf16.msra.mxu0 %v3994_v18  ;;  %3722 = vmatpush3.bf16.msra.mxu1 %v3995_v19 }
 0x19f   : > { %3689 = vmatprep.subr.bf16.mxu0 %v3996_v20  ;;  %3723 = vmatprep.subr.bf16.mxu1 %v3997_v21 }
 0x1a2   : > { %3690 = vmatpush3.bf16.msra.mxu0 %v3998_v22  ;;  %3724 = vmatpush3.bf16.msra.mxu1 %v3999_v23 }
 0x1a3   : > { %3691 = vmatprep.subr.bf16.mxu0 %v4000_v26  ;;  %3725 = vmatprep.subr.bf16.mxu1 %v4001_v27  ;;  %v4026_v27 = vld [vmem:[#allocation8 + $0x100] sm:$0xff]  }
 0x1a4   : > { %2263 = vmatmul.mubr.bf16.gmra.mrb[16].mxu0 %v4548_v2  ;;  %2385 = vmatmul.mubr.bf16.gmra.mrb[16].mxu1 %v4548_v2  ;;  %v4013_v2 = vld [vmem:[#allocation8 + $0xe8] sm:$0xff]  }
 0x1a5   : > { %2272 = vmatprep.mubr.bf16.mxu0 %v4551_v11  ;;  %2394 = vmatprep.mubr.bf16.mxu1 %v4551_v11  ;;  %v4014_v11 = vld [vmem:[#allocation8 + $0x28] sm:$0xff]  }
 0x1a6   : > { %3692 = vmatpush3.bf16.msra.mxu0 %v4002_v28  ;;  %3726 = vmatpush3.bf16.msra.mxu1 %v4003_v29 }
 0x1a7   : > { %3693 = vmatprep.subr.bf16.mxu0 %v4004_v30  ;;  %3727 = vmatprep.subr.bf16.mxu1 %v4005_v45 }
 0x1aa   : > { %3694 = vmatpush3.bf16.msra.mxu0 %v4006_v55  ;;  %3728 = vmatpush3.bf16.msra.mxu1 %v4007_v31  ;;  %v4027_v55 = vld [vmem:[#allocation8 + $0x180] sm:$0xff]   ;;  %v4028_v31 = vld [vmem:[#allocation8 + $0x148] sm:$0xff]  }
 0x1ab   : > { %3695 = vmatprep.subr.bf16.mxu0 %v4008_v32  ;;  %3729 = vmatprep.subr.bf16.mxu1 %v4009_v33 }
 0x1ac   : > { %2273 = vmatmul.mubr.bf16.gmra.mrb[20].mxu0 %v4558_v24  ;;  %2395 = vmatmul.mubr.bf16.gmra.mrb[20].mxu1 %v4558_v24  ;;  %v4023_v24 = vld [vmem:[#allocation8 + $0xb8] sm:$0xff]  }
 0x1ae   : > { %3696 = vmatpush3.bf16.msra.mxu0 %v4010_v34  ;;  %3730 = vmatpush3.bf16.msra.mxu1 %v4011_v15 }
 0x1af   : > { %3697 = vmatprep.subr.bf16.mxu0 %v4012_v35  ;;  %3731 = vmatprep.subr.bf16.mxu1 %v4013_v2  ;;  %v4029_v35 = vld [vmem:[#allocation8 + $0x1c8] sm:$0xff]  }
 0x1b2   : > { %3698 = vmatpush3.bf16.msra.mxu0 %v4014_v11  ;;  %3732 = vmatpush3.bf16.msra.mxu1 %v4015_v36 }
 0x1b3   : > { %3699 = vmatprep.subr.bf16.mxu0 %v4016_v37  ;;  %3733 = vmatprep.subr.bf16.mxu1 %v4017_v39 }
 0x1b6   : > { %3700 = vmatpush3.bf16.msra.mxu0 %v4018_v40  ;;  %3734 = vmatpush3.bf16.msra.mxu1 %v4019_v41 }
 0x1b7   : > { %3701 = vmatprep.subr.bf16.mxu0 %v4020_v42  ;;  %3735 = vmatprep.subr.bf16.mxu1 %v4021_v25  ;;  %v4030_v42 = vld [vmem:[#allocation8 + $0x108] sm:$0xff]  }
 0x1ba   : > { %3702 = vmatpush3.bf16.msra.mxu0 %v4022_v43  ;;  %3736 = vmatpush3.bf16.msra.mxu1 %v4023_v24 }
 0x1bb   : > { %3755 = vmatprep.subr.bf16.mxu0 %v4024_v44  ;;  %3789 = vmatprep.subr.bf16.mxu1 %v4025_v46  ;;  %v4031_v44 = vld [vmem:[#allocation8 + $0x188] sm:$0xff]   ;;  %v4032_v46 = vld [vmem:[#allocation8 + $0x150] sm:$0xff]  }
 0x1ef   : > { %v2010_v58 = vpop.f32.mrb[0].mxu0  ;;  %v2132_v60 = vpop.f32.mrb[0].mxu1 }
 0x1f0   : > { %v3823_v48 = vadd.f32 %v2010_v58, %v4595_v54  ;;  %v2012_v62 = vpop.f32.mrb[1].mxu0  ;;  %v3833_v63 = vadd.f32 %v2132_v60, %v4598_v56  ;;  %v2134_v1 = vpop.f32.mrb[1].mxu1 }
 0x1f1   : > { %v3824_v0 = vadd.f32 %v2012_v62, %v4601_v57  ;;  %v2014_v3 = vpop.f32.mrb[2].mxu0  ;;  %v3834_v4 = vadd.f32 %v2134_v1, %v4604_v59  ;;  %v2136_v61 = vpop.f32.mrb[2].mxu1  ;;  %v4034_v1 = vld [vmem:[#allocation8 + $0x110] sm:$0xff]  }
 0x1f2   : > { %v3825_v5 = vadd.f32 %v2014_v3, %v4595_v54  ;;  %v2016_v7 = vpop.f32.mrb[3].mxu0  ;;  %v3835_v8 = vadd.f32 %v2136_v61, %v4598_v56  ;;  %v2138_v10 = vpop.f32.mrb[3].mxu1  ;;  %v2403_v12 = vmax.f32 %v3823_v48, 0.0  ;;  %v2405_v16 = vmax.f32 %v3833_v63, 0.0 }
 0x1f3   : > { %v3826_v9 = vadd.f32 %v2016_v7, %v4601_v57  ;;  %v3836_v14 = vadd.f32 %v2138_v10, %v4604_v59  ;;  %v2404_v6 = vmax.f32 %v3824_v0, 0.0  ;;  %v2406_v19 = vmax.f32 %v3834_v4, 0.0  ;;  %v4035_v7 = vld [vmem:[#allocation8 + $0x190] sm:$0xff]  }
 0x1f4   : > { %v2411_v13 = vmax.f32 %v3825_v5, 0.0  ;;  %v2413_v17 = vmax.f32 %v3835_v8, 0.0  ;;  %v4036_v8 = vld [vmem:[#allocation8 + $0x158] sm:$0xff]  }
 0x1f5   : > { %v2412_v18 = vmax.f32 %v3826_v9, 0.0  ;;  %v2414_v21 = vmax.f32 %v3836_v14, 0.0  ;;  %v4037_v14 = vld [vmem:[#allocation8 + $0x1d8] sm:$0xff]  }
 0x1f6   : > { %v2443_v20 = vpack.c.bf16 %v2411_v13, %v2403_v12  ;;  %v2445_v22 = vpack.c.bf16 %v2413_v17, %v2405_v16 }
 0x1f7   : > { %v2444_v23 = vpack.c.bf16 %v2412_v18, %v2404_v6  ;;  %v2020_v26 = vpop.f32.mrb[4].mxu0  ;;  %v2446_v28 = vpack.c.bf16 %v2414_v21, %v2406_v19  ;;  %v2142_v30 = vpop.f32.mrb[4].mxu1  ;;  %v4038_v19 = vld [vmem:[#allocation8 + $0x118] sm:$0xff]  }
 0x1f8   : > { %v3827_v29 = vadd.f32 %v2020_v26, %v4595_v54  ;;  %v2022_v45 = vpop.f32.mrb[5].mxu0  ;;  %v3837_v32 = vadd.f32 %v2142_v30, %v4598_v56  ;;  %v2144_v34 = vpop.f32.mrb[5].mxu1  ;;  %v4041_v26 = vld [vmem:[#allocation8 + $0x1e0] sm:$0xff]   ;;  %v4044_v30 = vld [vmem:[#allocation8 + $0x168] sm:$0xff]  }
 0x1f9   : > { %v3828_v33 = vadd.f32 %v2022_v45, %v4601_v57  ;;  %v2024_v15 = vpop.f32.mrb[6].mxu0  ;;  %3018 = vmatprep.mubr.bf16.mxu0 %v2444_v23  ;;  %v3838_v2 = vadd.f32 %v2144_v34, %v4604_v59  ;;  %v2146_v36 = vpop.f32.mrb[6].mxu1  ;;  %3074 = vmatprep.mubr.bf16.mxu1 %v2446_v28  ;;  %v4040_v23 = vld [vmem:[#allocation8 + $0x160] sm:$0xff]   ;;  %v4049_v34 = vld [vmem:[#allocation8 + $0x1f0] sm:$0xff]  }
 0x1fa   : > { %v3829_v11 = vadd.f32 %v2024_v15, %v4595_v54  ;;  %v2026_v37 = vpop.f32.mrb[7].mxu0  ;;  %3019 = vmatmul.mubr.bf16.vlgmr.msra.gmra.mrb[24].mxu0 %v2443_v20  ;;  %v3839_v39 = vadd.f32 %v2146_v36, %v4598_v56  ;;  %v2148_v41 = vpop.f32.mrb[7].mxu1  ;;  %3075 = vmatmul.mubr.bf16.vlgmr.msra.gmra.mrb[24].mxu1 %v2445_v22  ;;  %v2419_v25 = vmax.f32 %v3827_v29, 0.0  ;;  %v2421_v47 = vmax.f32 %v3837_v32, 0.0  ;;  %v4043_v29 = vld [vmem:[#allocation8 + $0x1a0] sm:$0xff]   ;;  %v4047_v32 = vld [vmem:[#allocation8 + $0x1a8] sm:$0xff]  }
 0x1fb   : > { %v3830_v40 = vadd.f32 %v2026_v37, %v4601_v57  ;;  %3756 = vmatpush3.bf16.msra.mxu0 %v4026_v27  ;;  %v3840_v24 = vadd.f32 %v2148_v41, %v4604_v59  ;;  %3790 = vmatpush3.bf16.msra.mxu1 %v4027_v55  ;;  %v2420_v50 = vmax.f32 %v3828_v33, 0.0  ;;  %v2422_v58 = vmax.f32 %v3838_v2, 0.0  ;;  %v4042_v27 = vld [vmem:[#allocation8 + $0x120] sm:$0xff]   ;;  %v4045_v55 = vld [vmem:[#allocation8 + $0x1e8] sm:$0xff]   ;;  %v4048_v33 = vld [vmem:[#allocation8 + $0x170] sm:$0xff]  }
 0x1fc   : > { %v2427_v43 = vmax.f32 %v3829_v11, 0.0  ;;  %3757 = vmatprep.subr.bf16.mxu0 %v4028_v31  ;;  %v2429_v52 = vmax.f32 %v3839_v39, 0.0  ;;  %3791 = vmatprep.subr.bf16.mxu1 %v4029_v35  ;;  %v4046_v31 = vld [vmem:[#allocation8 + $0x128] sm:$0xff]   ;;  %v4050_v15 = vld [vmem:[#allocation8 + $0x130] sm:$0xff]   ;;  %v4052_v2 = vld [vmem:[#allocation8 + $0x178] sm:$0xff]   ;;  %v613_v39 = vsub.s32 4, %v4586_v49 }
 0x1fd   : > { %v2428_v38 = vmax.f32 %v3830_v40, 0.0  ;;  %v2430_v60 = vmax.f32 %v3840_v24, 0.0  ;;  %v4051_v35 = vld [vmem:[#allocation8 + $0x1b0] sm:$0xff]   ;;  %v4053_v11 = vld [vmem:[#allocation8 + $0x1f8] sm:$0xff]   ;;  %v621_v40 = vsub.s32 6, %v4586_v49  ;;  %v617_v41 = vsub.s32 5, %v4586_v49 }
 0x1fe   : > { %v2451_v48 = vpack.c.bf16 %v2427_v43, %v2419_v25  ;;  %v2453_v62 = vpack.c.bf16 %v2429_v52, %v2421_v47  ;;  %v4054_v36 = vld [vmem:[#allocation8 + $0x138] sm:$0xff]   ;;  %v4631_v25 = vrot.slane %v4589_v51, %v613_v39 }
 0x1ff   : > { %v2452_v63 = vpack.c.bf16 %v2428_v38, %v2420_v50  ;;  %v2030_v0 = vpop.f32.mrb[8].mxu0  ;;  %3758 = vmatpush3.bf16.msra.mxu0 %v4030_v42  ;;  %v2454_v3 = vpack.c.bf16 %v2430_v60, %v2422_v58  ;;  %v2152_v5 = vpop.f32.mrb[8].mxu1  ;;  %3792 = vmatpush3.bf16.msra.mxu1 %v4031_v44  ;;  %v4055_v37 = vld [vmem:[#allocation8 + $0x1b8] sm:$0xff]   ;;  %v625_v42 = vsub.s32 7, %v4586_v49  ;;  %v4634_v43 = vrot.slane %v4589_v51, %v621_v40 }
 0x200   : > { %v3831_v4 = vadd.f32 %v2030_v0, %v4595_v54  ;;  %v2032_v61 = vpop.f32.mrb[9].mxu0  ;;  %3759 = vmatprep.subr.bf16.mxu0 %v4032_v46  ;;  %v3841_v9 = vadd.f32 %v2152_v5, %v4598_v56  ;;  %v2154_v12 = vpop.f32.mrb[9].mxu1  ;;  %3793 = vmatprep.subr.bf16.mxu1 %v4033_v53  ;;  %v4637_v24 = vrot.slane %v4589_v51, %v617_v41 }
 0x201   : > { %v3832_v10 = vadd.f32 %v2032_v61, %v4601_v57  ;;  %v2034_v13 = vpop.f32.mrb[10].mxu0  ;;  %3026 = vmatprep.mubr.bf16.mxu0 %v2452_v63  ;;  %v3842_v16 = vadd.f32 %v2154_v12, %v4604_v59  ;;  %v2156_v6 = vpop.f32.mrb[10].mxu1  ;;  %3082 = vmatprep.mubr.bf16.mxu1 %v2454_v3  ;;  %v4039_v57 = vld [vmem:[#allocation8 + $0x198] sm:$0xff]   ;;  %v4640_v44 = vrot.slane %v4589_v51, %v625_v42 }
 0x202   : > { %v2035_v54 = vpop.f32.mrb[11].mxu0  ;;  %3027 = vmatmul.mubr.bf16.gmra.mrb[28].mxu0 %v2451_v48  ;;  %v2157_v18 = vpop.f32.mrb[11].mxu1  ;;  %3083 = vmatmul.mubr.bf16.gmra.mrb[28].mxu1 %v2453_v62  ;;  %v2435_v20 = vmax.f32 %v3831_v4, 0.0  ;;  %v2437_v21 = vmax.f32 %v3841_v9, 0.0 }
 0x203   : > { %v2436_v17 = vmax.f32 %v3832_v10, 0.0  ;;  %3760 = vmatpush3.bf16.msra.mxu0 %v4034_v1  ;;  %v2438_v56 = vmax.f32 %v3842_v16, 0.0  ;;  %3794 = vmatpush3.bf16.msra.mxu1 %v4035_v7 }
 0x204   : > { %3761 = vmatprep.subr.bf16.mxu0 %v4036_v8  ;;  %3795 = vmatprep.subr.bf16.mxu1 %v4037_v14  ;;  %v2459_v28 = vpack.c.bf16 %v2435_v20, %v2435_v20  ;;  %v2461_v45 = vpack.c.bf16 %v2437_v21, %v2437_v21 }
 0x205   : > { %v2460_v22 = vpack.c.bf16 %v2436_v17, %v2436_v17  ;;  %v2462_v59 = vpack.c.bf16 %v2438_v56, %v2438_v56 }
 0x207   : > { %3034 = vmatprep.mubr.bf16.mxu0 %v2460_v22  ;;  %3762 = vmatpush3.bf16.msra.mxu0 %v4038_v19 }
 0x208   : > { %3090 = vmatprep.mubr.bf16.mxu1 %v2462_v59  ;;  %3796 = vmatpush3.bf16.msra.mxu1 %v4039_v57 }
 0x209   : > { %3763 = vmatprep.subr.bf16.mxu0 %v4040_v23  ;;  %3797 = vmatprep.subr.bf16.mxu1 %v4041_v26 }
 0x20a   : > { %3035 = vmatmul.mubr.bf16.gmra.mrb[32].mxu0 %v2459_v28  ;;  %3091 = vmatmul.mubr.bf16.gmra.mrb[32].mxu1 %v2461_v45 }
 0x20b   : > { %3764 = vmatpush3.bf16.msra.mxu0 %v4042_v27 }
 0x20c   : > { %3798 = vmatpush3.bf16.msra.mxu1 %v4043_v29  ;;  %3765 = vmatprep.subr.bf16.mxu0 %v4044_v30 }
 0x20d   : > { %3799 = vmatprep.subr.bf16.mxu1 %v4045_v55 }
 0x20f   : > { %3766 = vmatpush3.bf16.msra.mxu0 %v4046_v31 }
 0x210   : > { %3800 = vmatpush3.bf16.msra.mxu1 %v4047_v32  ;;  %3767 = vmatprep.subr.bf16.mxu0 %v4048_v33 }
 0x211   : > { %3801 = vmatprep.subr.bf16.mxu1 %v4049_v34 }
 0x213   : > { %3768 = vmatpush3.bf16.msra.mxu0 %v4050_v15 }
 0x214   : > { %3802 = vmatpush3.bf16.msra.mxu1 %v4051_v35  ;;  %3769 = vmatprep.subr.bf16.mxu0 %v4052_v2 }
 0x215   : > { %3803 = vmatprep.subr.bf16.mxu1 %v4053_v11 }
 0x217   : > { %3770 = vmatpush3.bf16.msra.mxu0 %v4054_v36 }
 0x218   : > { %3804 = vmatpush3.bf16.msra.mxu1 %v4055_v37 }
 0x26f   : > { %v2254_v46 = vpop.f32.mrb[12].mxu0  ;;  %v2376_v50 = vpop.f32.mrb[12].mxu1 }
 0x270   : > { %v3843_v47 = vadd.f32 %v2254_v46, %v4631_v25  ;;  %v2256_v52 = vpop.f32.mrb[13].mxu0  ;;  %v3853_v38 = vadd.f32 %v2376_v50, %v4634_v43  ;;  %v2378_v53 = vpop.f32.mrb[13].mxu1 }
 0x271   : > { %v3844_v49 = vadd.f32 %v2256_v52, %v4637_v24  ;;  %v2258_v58 = vpop.f32.mrb[14].mxu0  ;;  %v3854_v48 = vadd.f32 %v2378_v53, %v4640_v44  ;;  %v2380_v62 = vpop.f32.mrb[14].mxu1 }
 0x272   : > { %v3845_v60 = vadd.f32 %v2258_v58, %v4631_v25  ;;  %v2260_v63 = vpop.f32.mrb[15].mxu0  ;;  %v3855_v51 = vadd.f32 %v2380_v62, %v4634_v43  ;;  %v2382_v1 = vpop.f32.mrb[15].mxu1  ;;  %v2407_v3 = vmax.f32 %v3843_v47, 0.0  ;;  %v2409_v61 = vmax.f32 %v3853_v38, 0.0 }
 0x273   : > { %v3846_v0 = vadd.f32 %v2260_v63, %v4637_v24  ;;  %v3856_v5 = vadd.f32 %v2382_v1, %v4640_v44  ;;  %v2408_v7 = vmax.f32 %v3844_v49, 0.0  ;;  %v2410_v10 = vmax.f32 %v3854_v48, 0.0  ;;  %v3610_v1 = vld [vmem:[%s4740_s4] ss:$0 sm:$0xff] }
 0x274   : > { %v2415_v4 = vmax.f32 %v3845_v60, 0.0  ;;  %v2417_v8 = vmax.f32 %v3855_v51, 0.0 }
 0x275   : > { %v2416_v9 = vmax.f32 %v3846_v0, 0.0  ;;  %v2418_v13 = vmax.f32 %v3856_v5, 0.0 }
 0x276   : > { %v2447_v12 = vpack.c.bf16 %v2415_v4, %v2407_v3  ;;  %v2449_v14 = vpack.c.bf16 %v2417_v8, %v2409_v61 }
 0x277   : > { %v2448_v16 = vpack.c.bf16 %v2416_v9, %v2408_v7  ;;  %v2264_v6 = vpop.f32.mrb[16].mxu0  ;;  %v2450_v54 = vpack.c.bf16 %v2418_v13, %v2410_v10  ;;  %v2386_v18 = vpop.f32.mrb[16].mxu1 }
 0x278   : > { %v3847_v17 = vadd.f32 %v2264_v6, %v4631_v25  ;;  %v2266_v19 = vpop.f32.mrb[17].mxu0  ;;  %v3857_v20 = vadd.f32 %v2386_v18, %v4634_v43  ;;  %v2388_v57 = vpop.f32.mrb[17].mxu1 }
 0x279   : > { %v3848_v56 = vadd.f32 %v2266_v19, %v4637_v24  ;;  %v2268_v21 = vpop.f32.mrb[18].mxu0  ;;  %3130 = vmatprep.mubr.bf16.mxu0 %v2448_v16  ;;  %v3858_v22 = vadd.f32 %v2388_v57, %v4640_v44  ;;  %v2390_v26 = vpop.f32.mrb[18].mxu1  ;;  %3186 = vmatprep.mubr.bf16.mxu1 %v2450_v54 }
 0x27a   : > { %v3849_v23 = vadd.f32 %v2268_v21, %v4631_v25  ;;  %v2270_v59 = vpop.f32.mrb[19].mxu0  ;;  %3131 = vmatmul.mubr.bf16.vlgmr.msra.gmra.mrb[36].mxu0 %v2447_v12  ;;  %v3859_v27 = vadd.f32 %v2390_v26, %v4634_v43  ;;  %v2392_v29 = vpop.f32.mrb[19].mxu1  ;;  %3187 = vmatmul.mubr.bf16.vlgmr.msra.gmra.mrb[36].mxu1 %v2449_v14  ;;  %v2423_v30 = vmax.f32 %v3847_v17, 0.0  ;;  %v2425_v31 = vmax.f32 %v3857_v20, 0.0 }
 0x27b   : > { %v3850_v28 = vadd.f32 %v2270_v59, %v4637_v24  ;;  %v3860_v55 = vadd.f32 %v2392_v29, %v4640_v44  ;;  %v2424_v32 = vmax.f32 %v3848_v56, 0.0  ;;  %v2426_v15 = vmax.f32 %v3858_v22, 0.0 }
 0x27c   : > { %v2431_v45 = vmax.f32 %v3849_v23, 0.0  ;;  %v2433_v33 = vmax.f32 %v3859_v27, 0.0 }
 0x27d   : > { %v2432_v34 = vmax.f32 %v3850_v28, 0.0  ;;  %v2434_v2 = vmax.f32 %v3860_v55, 0.0 }
 0x27e   : > { %v2455_v35 = vpack.c.bf16 %v2431_v45, %v2423_v30  ;;  %v2457_v11 = vpack.c.bf16 %v2433_v33, %v2425_v31 }
 0x27f   : > { %v2456_v36 = vpack.c.bf16 %v2432_v34, %v2424_v32  ;;  %v2274_v37 = vpop.f32.mrb[20].mxu0  ;;  %v2458_v39 = vpack.c.bf16 %v2434_v2, %v2426_v15  ;;  %v2396_v41 = vpop.f32.mrb[20].mxu1 }
 0x280   : > { %v3851_v40 = vadd.f32 %v2274_v37, %v4631_v25  ;;  %v2276_v42 = vpop.f32.mrb[21].mxu0  ;;  %v3861_v46 = vadd.f32 %v2396_v41, %v4634_v43  ;;  %v2398_v50 = vpop.f32.mrb[21].mxu1 }
 0x281   : > { %v3852_v47 = vadd.f32 %v2276_v42, %v4637_v24  ;;  %v2278_v52 = vpop.f32.mrb[22].mxu0  ;;  %3138 = vmatprep.mubr.bf16.mxu0 %v2456_v36  ;;  %v3862_v38 = vadd.f32 %v2398_v50, %v4640_v44  ;;  %v2400_v49 = vpop.f32.mrb[22].mxu1  ;;  %3194 = vmatprep.mubr.bf16.mxu1 %v2458_v39 }
 0x282   : > { %v2279_v53 = vpop.f32.mrb[23].mxu0  ;;  %3139 = vmatmul.mubr.bf16.gmra.mrb[40].mxu0 %v2455_v35  ;;  %v2401_v48 = vpop.f32.mrb[23].mxu1  ;;  %3195 = vmatmul.mubr.bf16.gmra.mrb[40].mxu1 %v2457_v11  ;;  %v2439_v60 = vmax.f32 %v3851_v40, 0.0  ;;  %v2441_v62 = vmax.f32 %v3861_v46, 0.0 }
 0x283   : > { %v2440_v58 = vmax.f32 %v3852_v47, 0.0  ;;  %v2442_v25 = vmax.f32 %v3862_v38, 0.0 }
 0x284   : > { %v2463_v43 = vpack.c.bf16 %v2439_v60, %v2439_v60  ;;  %v2465_v24 = vpack.c.bf16 %v2441_v62, %v2441_v62 }
 0x285   : > { %v2464_v63 = vpack.c.bf16 %v2440_v58, %v2440_v58  ;;  %v2466_v51 = vpack.c.bf16 %v2442_v25, %v2442_v25 }
 0x287   : > { %3146 = vmatprep.mubr.bf16.mxu0 %v2464_v63  ;;  %3202 = vmatprep.mubr.bf16.mxu1 %v2466_v51 }
 0x28a   : > { %3147 = vmatmul.mubr.bf16.gmra.mrb[44].mxu0 %v2463_v43  ;;  %3203 = vmatmul.mubr.bf16.gmra.mrb[44].mxu1 %v2465_v24 }
 0x2cd   : > { %v3703_v0 = vpop.f32.mrb[24].mxu0  ;;  %v3737_v44 = vpop.f32.mrb[24].mxu1 }
 0x2ce   : > { %v3704_v3 = vpop.f32.mrb[25].mxu0  ;;  %v3738_v5 = vpop.f32.mrb[25].mxu1 }
 0x2cf   : > { %v3705_v4 = vadd.f32 %v3704_v3, %v3703_v0  ;;  %v3706_v61 = vpop.f32.mrb[26].mxu0  ;;  %v3739_v7 = vadd.f32 %v3738_v5, %v3737_v44  ;;  %v3740_v8 = vpop.f32.mrb[26].mxu1 }
 0x2d0   : > { %v3707_v9 = vpop.f32.mrb[27].mxu0  ;;  %v3741_v13 = vpop.f32.mrb[27].mxu1 }
 0x2d1   : > { %v3021_v10 = vadd.f32 %v3705_v4, %v3610_v1  ;;  %v3708_v12 = vadd.f32 %v3707_v9, %v3706_v61  ;;  %v3742_v14 = vadd.f32 %v3741_v13, %v3740_v8 }
 0x2d3   : > { %v3077_v16 = vadd.f32 %v3739_v7, %v3021_v10  ;;  %v3024_v6 = vadd.f32 %v3708_v12, %v3610_v1 }
 0x2d5   : > { %v3080_v54 = vadd.f32 %v3742_v14, %v3024_v6  ;;  %v3709_v17 = vpop.f32.mrb[28].mxu0  ;;  %v3743_v18 = vpop.f32.mrb[28].mxu1 }
 0x2d6   : > { %v3710_v19 = vpop.f32.mrb[29].mxu0  ;;  %v3744_v56 = vpop.f32.mrb[29].mxu1 }
 0x2d7   : > { %v3711_v20 = vadd.f32 %v3710_v19, %v3709_v17  ;;  %v3712_v57 = vpop.f32.mrb[30].mxu0  ;;  %v3745_v21 = vadd.f32 %v3744_v56, %v3743_v18  ;;  %v3746_v22 = vpop.f32.mrb[30].mxu1 }
 0x2d8   : > { %v3713_v23 = vpop.f32.mrb[31].mxu0  ;;  %v3747_v27 = vpop.f32.mrb[31].mxu1 }
 0x2d9   : > { %v3029_v26 = vadd.f32 %v3711_v20, %v3610_v1  ;;  %v3714_v59 = vadd.f32 %v3713_v23, %v3712_v57  ;;  %v3748_v28 = vadd.f32 %v3747_v27, %v3746_v22 }
 0x2db   : > { %v3085_v29 = vadd.f32 %v3745_v21, %v3029_v26  ;;  %v3032_v30 = vadd.f32 %v3714_v59, %v3610_v1 }
 0x2dd   : > { %v3088_v45 = vadd.f32 %v3748_v28, %v3032_v30  ;;  %v3715_v55 = vpop.f32.mrb[32].mxu0  ;;  %v3749_v31 = vpop.f32.mrb[32].mxu1 }
 0x2de   : > { %v3716_v32 = vpop.f32.mrb[33].mxu0  ;;  %v3750_v34 = vpop.f32.mrb[33].mxu1 }
 0x2df   : > { %v3717_v33 = vadd.f32 %v3716_v32, %v3715_v55  ;;  %v3718_v15 = vpop.f32.mrb[34].mxu0  ;;  %v3751_v35 = vadd.f32 %v3750_v34, %v3749_v31  ;;  %v3752_v2 = vpop.f32.mrb[34].mxu1 }
 0x2e0   : > { %v3719_v11 = vpop.f32.mrb[35].mxu0  ;;  %v3753_v37 = vpop.f32.mrb[35].mxu1 }
 0x2e1   : > { %v3037_v36 = vadd.f32 %v3717_v33, %v3610_v1 }
 0x2e3   : > { %v3093_v39 = vadd.f32 %v3751_v35, %v3037_v36 }
 0x34d   : > { %v3771_v40 = vpop.f32.mrb[36].mxu0  ;;  %v3805_v41 = vpop.f32.mrb[36].mxu1 }
 0x34e   : > { %v3772_v42 = vpop.f32.mrb[37].mxu0  ;;  %v3806_v47 = vpop.f32.mrb[37].mxu1 }
 0x34f   : > { %v3773_v46 = vadd.f32 %v3772_v42, %v3771_v40  ;;  %v3774_v50 = vpop.f32.mrb[38].mxu0  ;;  %v3807_v52 = vadd.f32 %v3806_v47, %v3805_v41  ;;  %v3808_v38 = vpop.f32.mrb[38].mxu1 }
 0x350   : > { %v3775_v49 = vpop.f32.mrb[39].mxu0  ;;  %v3809_v48 = vpop.f32.mrb[39].mxu1 }
 0x351   : > { %v3133_v53 = vadd.f32 %v3773_v46, %v3077_v16  ;;  %v3776_v58 = vadd.f32 %v3775_v49, %v3774_v50  ;;  %v3810_v60 = vadd.f32 %v3809_v48, %v3808_v38 }
 0x353   : > { %v3189_v25 = vadd.f32 %v3807_v52, %v3133_v53  ;;  %v3136_v62 = vadd.f32 %v3776_v58, %v3080_v54 }
 0x355   : > { %3210 = vst [vmem:[%s4666_s17] sm:$0xff] %v3189_v25  ;;  %v3192_v63 = vadd.f32 %v3810_v60, %v3136_v62  ;;  %v3777_v51 = vpop.f32.mrb[40].mxu0  ;;  %v3811_v43 = vpop.f32.mrb[40].mxu1 }
 0x356   : > { %v3778_v24 = vpop.f32.mrb[41].mxu0  ;;  %v3812_v44 = vpop.f32.mrb[41].mxu1 }
 0x357   : > { %3211 = vst [vmem:[%s4666_s17 + $0x8] sm:$0xff] %v3192_v63  ;;  %v3779_v0 = vadd.f32 %v3778_v24, %v3777_v51  ;;  %v3780_v1 = vpop.f32.mrb[42].mxu0  ;;  %v3813_v3 = vadd.f32 %v3812_v44, %v3811_v43  ;;  %v3814_v4 = vpop.f32.mrb[42].mxu1 }
 0x358   : > { %v3781_v5 = vpop.f32.mrb[43].mxu0  ;;  %v3815_v8 = vpop.f32.mrb[43].mxu1 }
 0x359   : > { %v3141_v61 = vadd.f32 %v3779_v0, %v3085_v29  ;;  %v3782_v7 = vadd.f32 %v3781_v5, %v3780_v1  ;;  %v3816_v9 = vadd.f32 %v3815_v8, %v3814_v4 }
 0x35b   : > { %v3197_v10 = vadd.f32 %v3813_v3, %v3141_v61  ;;  %v3144_v12 = vadd.f32 %v3782_v7, %v3088_v45 }
 0x35d   : > { %3212 = vst [vmem:[%s4666_s17 + $0x10] sm:$0xff] %v3197_v10  ;;  %v3200_v13 = vadd.f32 %v3816_v9, %v3144_v12  ;;  %v3783_v14 = vpop.f32.mrb[44].mxu0  ;;  %v3817_v16 = vpop.f32.mrb[44].mxu1 }
 0x35e   : > { %v3784_v6 = vpop.f32.mrb[45].mxu0  ;;  %v3818_v17 = vpop.f32.mrb[45].mxu1 }
 0x35f   : > { %3213 = vst [vmem:[%s4666_s17 + $0x18] sm:$0xff] %v3200_v13  ;;  %v3785_v54 = vadd.f32 %v3784_v6, %v3783_v14  ;;  %v3786_v18 = vpop.f32.mrb[46].mxu0  ;;  %v3819_v19 = vadd.f32 %v3818_v17, %v3817_v16  ;;  %v3820_v20 = vpop.f32.mrb[46].mxu1  ;;  %3222 = sbr.rel (!%p4763_p1) target bundleno = 898 (0x382), region = 60 }
 0x360   : > { %v3787_v56 = vpop.f32.mrb[47].mxu0  ;;  %v3821_v21 = vpop.f32.mrb[47].mxu1 }
 0x361   : > { %v3149_v57 = vadd.f32 %v3785_v54, %v3093_v39 }
 0x363   : > { %v3205_v22 = vadd.f32 %v3819_v19, %v3149_v57 }
 0x365   : > { %3214 = vst [vmem:[%s4666_s17 + $0x20] sm:$0xff] %v3205_v22 }
 0x366   : > { %s4773_s14 = smov (!%p3225_p3, %s3224_s14), 5 }
 0x367   : > { %s4677_s15 = sshll.u32 %s4773_s14, 7 }
 0x368   : > { %s3229_s16 = ssub.s32 640, %s4677_s15 }
 0x369   : > { %3230 = vsyncadd %s3216_s26, %s3229_s16  ;;  %p3676_p6 = scmp.ne.s32.totalorder %s4677_s15, 0  ;;  %s3685_s30 = smul.u32 640, %s4308_s22 }
 0x36a   : > { %s3235_s13 = sshll.u32 %s4666_s17, 4  ;;  %s4254_s27 = smov [#allocation10]   ;;  %s4690_s13 = int_to_ptr.vmem [resolvable:$true] %s3235_s13 }
 0x36b   : > { %s4688_s8 = scalar_lea.hbm %s4741_s5, %s3685_s30  ;;  %s4168_s12 = scalar_lea.vmem %s4690_s13, %s4677_s15 }
 0x36c   : > { %p4169_p5 = scmp.ne.s32.totalorder %s4690_s13, %s4168_s12  ;;  %s4172_s11 = sshll.u32 %s4254_s27, 4  ;;  %s4173_s11 = int_to_ptr.vmem [resolvable:$false] %s4172_s11 }
 0x36d   : > { %s4174_s22 = scalar_lea.vmem %s4173_s11, 1280  ;;  %p4175_p0 = scmp.lt.s32.totalorder %s4690_s13, %s4173_s11 }
 0x36e   : > { %p4170_p11 = pnand %p4169_p5, %p3676_p6  ;;  %p4176_p12 = scmp.lt.s32.totalorder %s4174_s22, %s4168_s12 }
 0x370   : > { %p4171_p13 = pneg %p4170_p11  ;;  %p4177_p7 = por %p4176_p12, %p4175_p0 }
 0x372   : > { %p4178_p2 = pnand %p4177_p7, %p4171_p13 }
 0x374   : > { %4181 = shalt.err (!%p4178_p2)
}
 0x375   : > { %s4182_s23 = scalar_lea.hbm %s4688_s8, %s4677_s15  ;;  %s4186_s10 = scalar_lea.hbm %s4741_s5, 1152 }
 0x376   : > { %p4183_p8 = scmp.ne.s32.totalorder %s4688_s8, %s4182_s23  ;;  %p4187_p1 = scmp.lt.u32.totalorder %s4688_s8, %s4741_s5 }
 0x377   : > { %p4188_p3 = scmp.lt.u32.totalorder %s4186_s10, %s4182_s23  ;;  %p4190_p11 = scmp.lt.u32.totalorder %s4182_s23, %s4688_s8 }
 0x378   : > { %p4184_p9 = pnand %p4183_p8, %p3676_p6 }
 0x379   : > { %p4189_p5 = por %p4188_p3, %p4187_p1 }
 0x37a   : > { %p4185_p10 = pneg %p4184_p9 }
 0x37b   : > { %p4191_p13 = por %p4190_p11, %p4189_p5 }
 0x37d   : > { %p4192_p0 = pnand %p4191_p13, %p4185_p10 }
 0x37f   : > { %4195 = shalt.err (!%p4192_p0)
}
 0x380   : > { %s4255_s14 = smov 128   ;;  %s4256_s16 = smov 8  }
 0x381   : > { %3241 = dma.vmem_to_hbm [thread:$0]  (%p3676_p6), %s4690_s13, %s4677_s15, %s4688_s8, %s3216_s26, %s4255_s14, %s4255_s14, %s4256_s16  }
 0x382 PF: > { %s3250_s30 = sand.u32 1, %s4230_s18   ;;  %p4764_p12 = scmp.ne.s32.totalorder %s4752_s6, 0 }
 0x383   : > { %s3251_s25 = scalar_lea.sflag [#allocation4], %s3250_s30 }
 0x384   : > { %p3939_p7 = pnand %p3342_p4, %p4764_p12 }
 0x386   : > { %4225 = dma.done.wait (!%p3939_p7), %s3251_s25, 640  }
 0x387   : > { %4227 = vsyncadd (!%p3939_p7), %s3251_s25, 4294966656  ;;  %s4765_s21 = sld [smem:[#allocation15_spill]]  ;;  %s4766_s28 = sld [smem:[#allocation16_spill]] }
 0x388   : > { %s4767_s18 = smov %s4234_s19  ;;  %s4768_s19 = smov %s4238_s20 }
 0x38d   : > { %p20_p2 = scmp.ge.s32.totalorder %s4765_s21, 4   ;;  %s4769_s20 = smov %s4766_s28 }
 0x38f   :  { %22 = sbr.rel (!%p20_p2) target bundleno = 7 (0x7), region = 97 }
 0x396   :  { %3256 = vsyncpa [#allocation3], 1 }
 0x397   :  { %3258 = vsyncpa [#allocation3 + $0x1], 1 }
 0x398   :  { %3259 = vsyncpa [#allocation6], 1 }
 0x399   :  { %3260 = vsyncpa [#allocation9], 1 }
 0x39a   :  { %3261 = vsyncpa [#allocation4], 1 }
 0x39b   :  { %3263 = vsyncpa [#allocation4 + $0x1], 1 }

</bundles_post_ra>
